<compile_context>
chip_gen: v6e
topology: v6e:2x2x1
jax: 0.10.0
libtpu: 0.0.40
codegen_flags: <defaults>
</compile_context>

<pallas_src>
import functools

import jax
import jax.numpy as jnp
from jax.experimental import pallas as pl
from jax.experimental.pallas import tpu as pltpu


M_TILE = 512                          # rows per 1x1-matmul grid step (v7x-safe)
VMEM_LIMIT_BYTES = 48 * 1024 * 1024   # < v7x's 64 MiB physical VMEM


def _round_up(x, m):
    return ((x + m - 1) // m) * m


def _pad_axis(x, axis, target):
    pad = target - x.shape[axis]
    if pad <= 0:
        return x
    cfg = [(0, 0)] * x.ndim
    cfg[axis] = (0, pad)
    return jnp.pad(x, cfg)


# ----------------------- 1x1 conv (plain matmul) kernels --------------------- #

def _mm_bias_relu_kernel(x_ref, w_ref, bias_ref, o_ref):
    y = jnp.dot(x_ref[...], w_ref[...], preferred_element_type=jnp.float32)
    o_ref[...] = jnp.maximum(y + bias_ref[...], 0.0).astype(o_ref.dtype)


def _mm_bias_res_relu_kernel(x_ref, w_ref, bias_ref, res_ref, o_ref):
    y = jnp.dot(x_ref[...], w_ref[...], preferred_element_type=jnp.float32)
    y = y + bias_ref[...] + res_ref[...].astype(jnp.float32)
    o_ref[...] = jnp.maximum(y, 0.0).astype(o_ref.dtype)


def _matmul_bias_relu(x2d, w2d, bias, residual=None, out_dtype=jnp.bfloat16):
    """x2d: (M, K) bf16, w2d: (K, N) bf16 (BN scale folded in), bias: (1, N) f32,
    residual: optional (M, N) bf16.  Weight stays VMEM-resident (no K grid axis)."""
    M, K = x2d.shape
    N = w2d.shape[1]
    assert K % 128 == 0 and N % 128 == 0

    m_tile = min(M_TILE, _round_up(M, 16))
    M_pad = _round_up(M, m_tile)
    if M_pad != M:
        x2d = _pad_axis(x2d, 0, M_pad)
        if residual is not None:
            residual = _pad_axis(residual, 0, M_pad)
    n_m = M_pad // m_tile

    in_specs = [
        pl.BlockSpec((m_tile, K), lambda i: (i, 0)),
        pl.BlockSpec((K, N), lambda i: (0, 0)),      # constant index -> one DMA
        pl.BlockSpec((1, N), lambda i: (0, 0)),
    ]
    args = [x2d, w2d, bias]
    kernel = _mm_bias_relu_kernel
    if residual is not None:
        in_specs.append(pl.BlockSpec((m_tile, N), lambda i: (i, 0)))
        args.append(residual)
        kernel = _mm_bias_res_relu_kernel

    out = pl.pallas_call(
        kernel,
        out_shape=jax.ShapeDtypeStruct((M_pad, N), out_dtype),
        grid_spec=pltpu.PrefetchScalarGridSpec(
            num_scalar_prefetch=0,
            grid=(n_m,),
            in_specs=in_specs,
            out_specs=pl.BlockSpec((m_tile, N), lambda i: (i, 0)),
        ),
        compiler_params=pltpu.CompilerParams(
            dimension_semantics=("parallel",),
            vmem_limit_bytes=VMEM_LIMIT_BYTES,
        ),
    )(*args)
    return out[:M] if M_pad != M else out


# ------------------------------ 3x3 conv kernel ------------------------------ #

def _conv3x3_kernel(x_ref, w_ref, bias_ref, o_ref, pad_ref, acc_ref, *, H, W, Ws):
    """3x3 conv (pad=1, stride=1) for one image as 9 shifted-slice matmuls.

    x_ref:   (1, H*W, C)  bf16, unpadded conv1 output (rows of length W)
    w_ref:   (9, C, Cout) bf16, tap-major weights (BN scale folded in)
    bias_ref:(1, Cout)    f32
    o_ref:   (1, H*W, Cout) bf16, already halo-cropped
    pad_ref: ((H+3)*Ws, C) bf16 scratch — padded activation built in VMEM
    acc_ref: (H*Ws, Cout) f32 scratch
    """
    L = H * Ws

    # Build the zero-padded activation in VMEM (no XLA-side jnp.pad round trip).
    # Image lives at rows 1..H, cols 1..W of an (H+3, Ws) buffer.
    pad_ref[...] = jnp.zeros_like(pad_ref)
    for i in range(H):
        d = (i + 1) * Ws + 1
        pad_ref[d:d + W, :] = x_ref[0, i * W:(i + 1) * W, :]

    # 9 tap matmuls; first tap assigns (no zero-init store of the accumulator).
    t = 0
    for kh in range(3):
        for kw in range(3):
            off = kh * Ws + kw                       # kh offsets sublane-aligned
            contrib = jnp.dot(pad_ref[off:off + L, :], w_ref[t],
                              preferred_element_type=jnp.float32)
            if t == 0:
                acc_ref[...] = contrib
            else:
                acc_ref[...] += contrib
            t += 1

    # Bias + ReLU on valid rows only, cropping the halo columns in-kernel.
    b = bias_ref[...]
    for i in range(H):
        row = acc_ref[i * Ws:i * Ws + W, :]
        o_ref[0, i * W:(i + 1) * W, :] = jnp.maximum(row + b, 0.0).astype(o_ref.dtype)


def _conv3x3_bias_relu(x_rows, w9, bias, B, H, W, out_dtype=jnp.bfloat16):
    """x_rows: (B, H*W, C) bf16, w9: (9, C, Cout) bf16, bias: (1, Cout) f32.
    Returns (B, H*W, Cout) out_dtype (already cropped)."""
    C = x_rows.shape[-1]
    Cout = w9.shape[-1]
    Ws = _round_up(W + 2, 8)          # padded row stride, sublane-aligned

    kernel = functools.partial(_conv3x3_kernel, H=H, W=W, Ws=Ws)
    return pl.pallas_call(
        kernel,
        out_shape=jax.ShapeDtypeStruct((B, H * W, Cout), out_dtype),
        grid_spec=pltpu.PrefetchScalarGridSpec(
            num_scalar_prefetch=0,
            grid=(B,),
            in_specs=[
                pl.BlockSpec((1, H * W, C), lambda b: (b, 0, 0)),
                pl.BlockSpec((9, C, Cout), lambda b: (0, 0, 0)),
                pl.BlockSpec((1, Cout), lambda b: (0, 0)),
            ],
            out_specs=pl.BlockSpec((1, H * W, Cout), lambda b: (b, 0, 0)),
            scratch_shapes=[
                pltpu.VMEM(((H + 3) * Ws, C), x_rows.dtype),
                pltpu.VMEM((H * Ws, Cout), jnp.float32),
            ],
        ),
        compiler_params=pltpu.CompilerParams(
            dimension_semantics=("parallel",),
            vmem_limit_bytes=VMEM_LIMIT_BYTES,
        ),
    )(x_rows, w9, bias)


# --------------------------- parameter preparation --------------------------- #

def _fold_bn(gamma, beta, mean, var, eps=1e-5):
    scale = gamma / jnp.sqrt(var + eps)
    bias = beta - mean * scale
    return (scale.reshape(1, -1).astype(jnp.float32),
            bias.reshape(1, -1).astype(jnp.float32))


def prepare_params(params):
    """One-time prep: fold BN scale into conv weights, keep only the bias,
    reshape weights for matmul, cast to bf16, zero-pad channels to 128."""
    planes, inplanes = params["w1"].shape[0], params["w1"].shape[1]
    cout = 4 * planes

    cin_p = _round_up(inplanes, 128)
    p_p = _round_up(planes, 128)
    cout_p = _round_up(cout, 128)

    s1, b1 = _fold_bn(*params["bn1"])
    s2, b2 = _fold_bn(*params["bn2"])
    s3, b3 = _fold_bn(*params["bn3"])

    # Fold the BN scale into the output-channel axis of each weight.
    w1 = params["w1"][:, :, 0, 0].T * s1                                   # (Cin, P)
    w2 = jnp.transpose(params["w2"], (2, 3, 1, 0)).reshape(9, planes, planes) * s2
    w3 = params["w3"][:, :, 0, 0].T * s3                                   # (P, 4P)

    def padw(w, kt, nt):
        return _pad_axis(_pad_axis(w, -2, kt), -1, nt).astype(jnp.bfloat16)

    return dict(
        w1=padw(w1, cin_p, p_p),
        w2=padw(w2, p_p, p_p),
        w3=padw(w3, p_p, cout_p),
        b1=_pad_axis(b1, -1, p_p),
        b2=_pad_axis(b2, -1, p_p),
        b3=_pad_axis(b3, -1, cout_p),
    )


# ---------------------------------- forward ---------------------------------- #

def bottleneck_forward(x_nchw, prep):
    """Bottleneck forward (stride=1, downsample=None, eval-mode BN).
    The Identity shortcut (`out + 0.0`) is a no-op and is dropped."""
    N, Cin, H, W = x_nchw.shape
    cin_p, p_p = prep["w1"].shape
    cout_p = prep["w3"].shape[1]
    assert cin_p == cout_p, "downsample=None requires inplanes == 4*planes"

    M = N * H * W
    x2d = jnp.transpose(x_nchw, (0, 2, 3, 1)).reshape(M, Cin)
    x2d = _pad_axis(x2d, -1, cin_p).astype(jnp.bfloat16)  # conv1 input AND residual

    # conv1 (1x1) + bn1 + relu
    out = _matmul_bias_relu(x2d, prep["w1"], prep["b1"])              # (M, p_p) bf16

    # conv2 (3x3, pad=1, stride=1) + bn2 + relu (pad/crop fused in-kernel)
    out = _conv3x3_bias_relu(out.reshape(N, H * W, p_p), prep["w2"], prep["b2"],
                             N, H, W)                                 # (N, H*W, p_p)

    # conv3 (1x1) + bn3 + residual + relu
    out = _matmul_bias_relu(out.reshape(M, p_p), prep["w3"], prep["b3"],
                            residual=x2d)                             # (M, cout_p) bf16

    out = out[:, :Cin].reshape(N, H, W, Cin)
    return jnp.transpose(out, (0, 3, 1, 2)).astype(jnp.float32)       # NCHW f32


# -------------------------------- test harness -------------------------------- #

def make_params(key, inplanes, planes):
    exp = 4
    keys = jax.random.split(key, 6)

    def bn_params(k, c):
        kg, kb, km, kv = jax.random.split(k, 4)
        gamma = 1.0 + 0.1 * jax.random.normal(kg, (c,), jnp.float32)
        beta = 0.1 * jax.random.normal(kb, (c,), jnp.float32)
        mean = 0.1 * jax.random.normal(km, (c,), jnp.float32)
        var = jnp.abs(1.0 + 0.1 * jax.random.normal(kv, (c,), jnp.float32))
        return (gamma, beta, mean, var)

    return {
        "w1": 0.1 * jax.random.normal(keys[0], (planes, inplanes, 1, 1), jnp.float32),
        "w2": 0.1 * jax.random.normal(keys[1], (planes, planes, 3, 3), jnp.float32),
        "w3": 0.1 * jax.random.normal(keys[2], (planes * exp, planes, 1, 1), jnp.float32),
        "bn1": bn_params(keys[3], planes),
        "bn2": bn_params(keys[4], planes),
        "bn3": bn_params(keys[5], planes * exp),
    }


if __name__ == "__main__":
    key = jax.random.PRNGKey(0)
    k_x, k_p = jax.random.split(key)

    # downsample=None requires inplanes == planes * expansion and stride == 1.
    batch, planes, spatial = 2, 4, 8
    inplanes = planes * 4                               # 16

    x = jax.random.normal(k_x, (batch, inplanes, spatial, spatial), jnp.float32)
    params = make_params(k_p, inplanes, planes)
    prep = prepare_params(params)                       # one-time weight/BN prep

    fwd = jax.jit(bottleneck_forward)
    out = fwd(x, prep)
    jax.block_until_ready(out)

    # sanity check against a pure-JAX reference (eval-mode BN)
    def ref_forward(x_nchw, p):
        def bn(y, bnp):
            g, b, m, v = bnp
            return (y - m[None, :, None, None]) / jnp.sqrt(v + 1e-5)[None, :, None, None] \
                   * g[None, :, None, None] + b[None, :, None, None]
        dn = jax.lax.conv_dimension_numbers(x_nchw.shape, p["w1"].shape,
                                            ("NCHW", "OIHW", "NCHW"))
        o = jax.lax.conv_general_dilated(x_nchw, p["w1"], (1, 1), "VALID",
                                         dimension_numbers=dn)
        o = jax.nn.relu(bn(o, p["bn1"]))
        o = jax.lax.conv_general_dilated(o, p["w2"], (1, 1), ((1, 1), (1, 1)),
                                         dimension_numbers=dn)
        o = jax.nn.relu(bn(o, p["bn2"]))
        o = jax.lax.conv_general_dilated(o, p["w3"], (1, 1), "VALID",
                                         dimension_numbers=dn)
        o = bn(o, p["bn3"]) + x_nchw
        return jax.nn.relu(o + 0.0)

    ref = ref_forward(x, params)
    assert out.shape == (batch, inplanes, spatial, spatial)
    # bf16 matmul operands / bf16 activations (f32 accumulate) -> loose tolerance
    err = float(jnp.max(jnp.abs(out - ref)))
    assert jnp.allclose(out, ref, atol=5e-2, rtol=5e-2), err

    print("KERNEL_OK")
</pallas_src>

<mosaic_0001>
module attributes {stable_mosaic.version = 11 : i64} {
  func.func @_conv3x3_kernel(%arg0: i32, %arg1: memref<1x64x128xbf16, #tpu.memory_space<vmem>>, %arg2: memref<9x128x128xbf16, #tpu.memory_space<vmem>>, %arg3: memref<1x128xf32, #tpu.memory_space<vmem>>, %arg4: memref<1x64x128xbf16, #tpu.memory_space<vmem>>, %arg5: memref<176x128xbf16, #tpu.memory_space<vmem>>, %arg6: memref<128x128xf32, #tpu.memory_space<vmem>>) attributes {dimension_semantics = [#tpu.dimension_semantics<parallel>], iteration_bounds = array<i64: 2>, scalar_prefetch = 0 : i64, scratch_operands = 2 : i64, tpu.core_type = #tpu.core_type<tc>, window_params = [{transform_indices = @transform_0, window_bounds = array<i64: 1, 64, 128>}, {pipeline_mode = #tpu.pipeline_mode<synchronous>, transform_indices = @transform_1, window_bounds = array<i64: 9, 128, 128>}, {pipeline_mode = #tpu.pipeline_mode<synchronous>, transform_indices = @transform_2, window_bounds = array<i64: 1, 128>}, {transform_indices = @transform_3, window_bounds = array<i64: 1, 64, 128>}]} {
    %cst = arith.constant 0.000000e+00 : bf16
    %0 = vector.broadcast %cst : bf16 to vector<176x128xbf16>
    %c0 = arith.constant 0 : index
    %c0_0 = arith.constant 0 : index
    %1 = vector.load %arg5[%c0, %c0_0] : memref<176x128xbf16, #tpu.memory_space<vmem>>, vector<176x128xbf16>
    tpu.vector_store %arg5[%c0, %c0_0], %0 {strides = array<i32>} : memref<176x128xbf16, #tpu.memory_space<vmem>>, vector<176x128xbf16>,
    %c0_1 = arith.constant 0 : index
    %c0_2 = arith.constant 0 : index
    %c0_3 = arith.constant 0 : index
    %2 = vector.load %arg1[%c0_1, %c0_2, %c0_3] : memref<1x64x128xbf16, #tpu.memory_space<vmem>>, vector<1x8x128xbf16>
    %3 = vector.shape_cast %2 : vector<1x8x128xbf16> to vector<8x128xbf16>
    %c17 = arith.constant 17 : index
    %c0_4 = arith.constant 0 : index
    %4 = vector.load %arg5[%c17, %c0_4] : memref<176x128xbf16, #tpu.memory_space<vmem>>, vector<8x128xbf16>
    tpu.vector_store %arg5[%c17, %c0_4], %3 {strides = array<i32>} : memref<176x128xbf16, #tpu.memory_space<vmem>>, vector<8x128xbf16>,
    %c0_5 = arith.constant 0 : index
    %c8 = arith.constant 8 : index
    %c0_6 = arith.constant 0 : index
    %5 = vector.load %arg1[%c0_5, %c8, %c0_6] : memref<1x64x128xbf16, #tpu.memory_space<vmem>>, vector<1x8x128xbf16>
    %6 = vector.shape_cast %5 : vector<1x8x128xbf16> to vector<8x128xbf16>
    %c33 = arith.constant 33 : index
    %c0_7 = arith.constant 0 : index
    %7 = vector.load %arg5[%c33, %c0_7] : memref<176x128xbf16, #tpu.memory_space<vmem>>, vector<8x128xbf16>
    tpu.vector_store %arg5[%c33, %c0_7], %6 {strides = array<i32>} : memref<176x128xbf16, #tpu.memory_space<vmem>>, vector<8x128xbf16>,
    %c0_8 = arith.constant 0 : index
    %c16 = arith.constant 16 : index
    %c0_9 = arith.constant 0 : index
    %8 = vector.load %arg1[%c0_8, %c16, %c0_9] : memref<1x64x128xbf16, #tpu.memory_space<vmem>>, vector<1x8x128xbf16>
    %9 = vector.shape_cast %8 : vector<1x8x128xbf16> to vector<8x128xbf16>
    %c49 = arith.constant 49 : index
    %c0_10 = arith.constant 0 : index
    %10 = vector.load %arg5[%c49, %c0_10] : memref<176x128xbf16, #tpu.memory_space<vmem>>, vector<8x128xbf16>
    tpu.vector_store %arg5[%c49, %c0_10], %9 {strides = array<i32>} : memref<176x128xbf16, #tpu.memory_space<vmem>>, vector<8x128xbf16>,
    %c0_11 = arith.constant 0 : index
    %c24 = arith.constant 24 : index
    %c0_12 = arith.constant 0 : index
    %11 = vector.load %arg1[%c0_11, %c24, %c0_12] : memref<1x64x128xbf16, #tpu.memory_space<vmem>>, vector<1x8x128xbf16>
    %12 = vector.shape_cast %11 : vector<1x8x128xbf16> to vector<8x128xbf16>
    %c65 = arith.constant 65 : index
    %c0_13 = arith.constant 0 : index
    %13 = vector.load %arg5[%c65, %c0_13] : memref<176x128xbf16, #tpu.memory_space<vmem>>, vector<8x128xbf16>
    tpu.vector_store %arg5[%c65, %c0_13], %12 {strides = array<i32>} : memref<176x128xbf16, #tpu.memory_space<vmem>>, vector<8x128xbf16>,
    %c0_14 = arith.constant 0 : index
    %c32 = arith.constant 32 : index
    %c0_15 = arith.constant 0 : index
    %14 = vector.load %arg1[%c0_14, %c32, %c0_15] : memref<1x64x128xbf16, #tpu.memory_space<vmem>>, vector<1x8x128xbf16>
    %15 = vector.shape_cast %14 : vector<1x8x128xbf16> to vector<8x128xbf16>
    %c81 = arith.constant 81 : index
    %c0_16 = arith.constant 0 : index
    %16 = vector.load %arg5[%c81, %c0_16] : memref<176x128xbf16, #tpu.memory_space<vmem>>, vector<8x128xbf16>
    tpu.vector_store %arg5[%c81, %c0_16], %15 {strides = array<i32>} : memref<176x128xbf16, #tpu.memory_space<vmem>>, vector<8x128xbf16>,
    %c0_17 = arith.constant 0 : index
    %c40 = arith.constant 40 : index
    %c0_18 = arith.constant 0 : index
    %17 = vector.load %arg1[%c0_17, %c40, %c0_18] : memref<1x64x128xbf16, #tpu.memory_space<vmem>>, vector<1x8x128xbf16>
    %18 = vector.shape_cast %17 : vector<1x8x128xbf16> to vector<8x128xbf16>
    %c97 = arith.constant 97 : index
    %c0_19 = arith.constant 0 : index
    %19 = vector.load %arg5[%c97, %c0_19] : memref<176x128xbf16, #tpu.memory_space<vmem>>, vector<8x128xbf16>
    tpu.vector_store %arg5[%c97, %c0_19], %18 {strides = array<i32>} : memref<176x128xbf16, #tpu.memory_space<vmem>>, vector<8x128xbf16>,
    %c0_20 = arith.constant 0 : index
    %c48 = arith.constant 48 : index
    %c0_21 = arith.constant 0 : index
    %20 = vector.load %arg1[%c0_20, %c48, %c0_21] : memref<1x64x128xbf16, #tpu.memory_space<vmem>>, vector<1x8x128xbf16>
    %21 = vector.shape_cast %20 : vector<1x8x128xbf16> to vector<8x128xbf16>
    %c113 = arith.constant 113 : index
    %c0_22 = arith.constant 0 : index
    %22 = vector.load %arg5[%c113, %c0_22] : memref<176x128xbf16, #tpu.memory_space<vmem>>, vector<8x128xbf16>
    tpu.vector_store %arg5[%c113, %c0_22], %21 {strides = array<i32>} : memref<176x128xbf16, #tpu.memory_space<vmem>>, vector<8x128xbf16>,
    %c0_23 = arith.constant 0 : index
    %c56 = arith.constant 56 : index
    %c0_24 = arith.constant 0 : index
    %23 = vector.load %arg1[%c0_23, %c56, %c0_24] : memref<1x64x128xbf16, #tpu.memory_space<vmem>>, vector<1x8x128xbf16>
    %24 = vector.shape_cast %23 : vector<1x8x128xbf16> to vector<8x128xbf16>
    %c129 = arith.constant 129 : index
    %c0_25 = arith.constant 0 : index
    %25 = vector.load %arg5[%c129, %c0_25] : memref<176x128xbf16, #tpu.memory_space<vmem>>, vector<8x128xbf16>
    tpu.vector_store %arg5[%c129, %c0_25], %24 {strides = array<i32>} : memref<176x128xbf16, #tpu.memory_space<vmem>>, vector<8x128xbf16>,
    %c0_26 = arith.constant 0 : index
    %c0_27 = arith.constant 0 : index
    %26 = vector.load %arg5[%c0_26, %c0_27] : memref<176x128xbf16, #tpu.memory_space<vmem>>, vector<128x128xbf16>
    %c0_28 = arith.constant 0 : index
    %c0_29 = arith.constant 0 : index
    %c0_30 = arith.constant 0 : index
    %27 = vector.load %arg2[%c0_28, %c0_29, %c0_30] : memref<9x128x128xbf16, #tpu.memory_space<vmem>>, vector<1x128x128xbf16>
    %28 = vector.shape_cast %27 : vector<1x128x128xbf16> to vector<128x128xbf16>
    %cst_31 = arith.constant dense<0.000000e+00> : vector<128x128xf32>
    %29 = tpu.matmul %26, %28, %cst_31 {dimension_numbers = #tpu.dot_dimension_numbers<[1], [0], [0], [1], [0, 0, 1, 1], [], []>} : vector<128x128xbf16>, vector<128x128xbf16>, vector<128x128xf32> -> vector<128x128xf32>
    %c0_32 = arith.constant 0 : index
    %c0_33 = arith.constant 0 : index
    %30 = vector.load %arg6[%c0_32, %c0_33] : memref<128x128xf32, #tpu.memory_space<vmem>>, vector<128x128xf32>
    tpu.vector_store %arg6[%c0_32, %c0_33], %29 {strides = array<i32>} : memref<128x128xf32, #tpu.memory_space<vmem>>, vector<128x128xf32>,
    %c1 = arith.constant 1 : index
    %c0_34 = arith.constant 0 : index
    %31 = vector.load %arg5[%c1, %c0_34] : memref<176x128xbf16, #tpu.memory_space<vmem>>, vector<128x128xbf16>
    %c1_35 = arith.constant 1 : index
    %c0_36 = arith.constant 0 : index
    %c0_37 = arith.constant 0 : index
    %32 = vector.load %arg2[%c1_35, %c0_36, %c0_37] : memref<9x128x128xbf16, #tpu.memory_space<vmem>>, vector<1x128x128xbf16>
    %33 = vector.shape_cast %32 : vector<1x128x128xbf16> to vector<128x128xbf16>
    %cst_38 = arith.constant dense<0.000000e+00> : vector<128x128xf32>
    %34 = tpu.matmul %31, %33, %cst_38 {dimension_numbers = #tpu.dot_dimension_numbers<[1], [0], [0], [1], [0, 0, 1, 1], [], []>} : vector<128x128xbf16>, vector<128x128xbf16>, vector<128x128xf32> -> vector<128x128xf32>
    %c0_39 = arith.constant 0 : index
    %c0_40 = arith.constant 0 : index
    %35 = vector.load %arg6[%c0_39, %c0_40] : memref<128x128xf32, #tpu.memory_space<vmem>>, vector<128x128xf32>
    %36 = arith.addf %35, %34 : vector<128x128xf32>
    %c0_41 = arith.constant 0 : index
    %c0_42 = arith.constant 0 : index
    %37 = vector.load %arg6[%c0_41, %c0_42] : memref<128x128xf32, #tpu.memory_space<vmem>>, vector<128x128xf32>
    tpu.vector_store %arg6[%c0_41, %c0_42], %36 {strides = array<i32>} : memref<128x128xf32, #tpu.memory_space<vmem>>, vector<128x128xf32>,
    %c2 = arith.constant 2 : index
    %c0_43 = arith.constant 0 : index
    %38 = vector.load %arg5[%c2, %c0_43] : memref<176x128xbf16, #tpu.memory_space<vmem>>, vector<128x128xbf16>
    %c2_44 = arith.constant 2 : index
    %c0_45 = arith.constant 0 : index
    %c0_46 = arith.constant 0 : index
    %39 = vector.load %arg2[%c2_44, %c0_45, %c0_46] : memref<9x128x128xbf16, #tpu.memory_space<vmem>>, vector<1x128x128xbf16>
    %40 = vector.shape_cast %39 : vector<1x128x128xbf16> to vector<128x128xbf16>
    %cst_47 = arith.constant dense<0.000000e+00> : vector<128x128xf32>
    %41 = tpu.matmul %38, %40, %cst_47 {dimension_numbers = #tpu.dot_dimension_numbers<[1], [0], [0], [1], [0, 0, 1, 1], [], []>} : vector<128x128xbf16>, vector<128x128xbf16>, vector<128x128xf32> -> vector<128x128xf32>
    %c0_48 = arith.constant 0 : index
    %c0_49 = arith.constant 0 : index
    %42 = vector.load %arg6[%c0_48, %c0_49] : memref<128x128xf32, #tpu.memory_space<vmem>>, vector<128x128xf32>
    %43 = arith.addf %42, %41 : vector<128x128xf32>
    %c0_50 = arith.constant 0 : index
    %c0_51 = arith.constant 0 : index
    %44 = vector.load %arg6[%c0_50, %c0_51] : memref<128x128xf32, #tpu.memory_space<vmem>>, vector<128x128xf32>
    tpu.vector_store %arg6[%c0_50, %c0_51], %43 {strides = array<i32>} : memref<128x128xf32, #tpu.memory_space<vmem>>, vector<128x128xf32>,
    %c16_52 = arith.constant 16 : index
    %c0_53 = arith.constant 0 : index
    %45 = vector.load %arg5[%c16_52, %c0_53] : memref<176x128xbf16, #tpu.memory_space<vmem>>, vector<128x128xbf16>
    %c3 = arith.constant 3 : index
    %c0_54 = arith.constant 0 : index
    %c0_55 = arith.constant 0 : index
    %46 = vector.load %arg2[%c3, %c0_54, %c0_55] : memref<9x128x128xbf16, #tpu.memory_space<vmem>>, vector<1x128x128xbf16>
    %47 = vector.shape_cast %46 : vector<1x128x128xbf16> to vector<128x128xbf16>
    %cst_56 = arith.constant dense<0.000000e+00> : vector<128x128xf32>
    %48 = tpu.matmul %45, %47, %cst_56 {dimension_numbers = #tpu.dot_dimension_numbers<[1], [0], [0], [1], [0, 0, 1, 1], [], []>} : vector<128x128xbf16>, vector<128x128xbf16>, vector<128x128xf32> -> vector<128x128xf32>
    %c0_57 = arith.constant 0 : index
    %c0_58 = arith.constant 0 : index
    %49 = vector.load %arg6[%c0_57, %c0_58] : memref<128x128xf32, #tpu.memory_space<vmem>>, vector<128x128xf32>
    %50 = arith.addf %49, %48 : vector<128x128xf32>
    %c0_59 = arith.constant 0 : index
    %c0_60 = arith.constant 0 : index
    %51 = vector.load %arg6[%c0_59, %c0_60] : memref<128x128xf32, #tpu.memory_space<vmem>>, vector<128x128xf32>
    tpu.vector_store %arg6[%c0_59, %c0_60], %50 {strides = array<i32>} : memref<128x128xf32, #tpu.memory_space<vmem>>, vector<128x128xf32>,
    %c17_61 = arith.constant 17 : index
    %c0_62 = arith.constant 0 : index
    %52 = vector.load %arg5[%c17_61, %c0_62] : memref<176x128xbf16, #tpu.memory_space<vmem>>, vector<128x128xbf16>
    %c4 = arith.constant 4 : index
    %c0_63 = arith.constant 0 : index
    %c0_64 = arith.constant 0 : index
    %53 = vector.load %arg2[%c4, %c0_63, %c0_64] : memref<9x128x128xbf16, #tpu.memory_space<vmem>>, vector<1x128x128xbf16>
    %54 = vector.shape_cast %53 : vector<1x128x128xbf16> to vector<128x128xbf16>
    %cst_65 = arith.constant dense<0.000000e+00> : vector<128x128xf32>
    %55 = tpu.matmul %52, %54, %cst_65 {dimension_numbers = #tpu.dot_dimension_numbers<[1], [0], [0], [1], [0, 0, 1, 1], [], []>} : vector<128x128xbf16>, vector<128x128xbf16>, vector<128x128xf32> -> vector<128x128xf32>
    %c0_66 = arith.constant 0 : index
    %c0_67 = arith.constant 0 : index
    %56 = vector.load %arg6[%c0_66, %c0_67] : memref<128x128xf32, #tpu.memory_space<vmem>>, vector<128x128xf32>
    %57 = arith.addf %56, %55 : vector<128x128xf32>
    %c0_68 = arith.constant 0 : index
    %c0_69 = arith.constant 0 : index
    %58 = vector.load %arg6[%c0_68, %c0_69] : memref<128x128xf32, #tpu.memory_space<vmem>>, vector<128x128xf32>
    tpu.vector_store %arg6[%c0_68, %c0_69], %57 {strides = array<i32>} : memref<128x128xf32, #tpu.memory_space<vmem>>, vector<128x128xf32>,
    %c18 = arith.constant 18 : index
    %c0_70 = arith.constant 0 : index
    %59 = vector.load %arg5[%c18, %c0_70] : memref<176x128xbf16, #tpu.memory_space<vmem>>, vector<128x128xbf16>
    %c5 = arith.constant 5 : index
    %c0_71 = arith.constant 0 : index
    %c0_72 = arith.constant 0 : index
    %60 = vector.load %arg2[%c5, %c0_71, %c0_72] : memref<9x128x128xbf16, #tpu.memory_space<vmem>>, vector<1x128x128xbf16>
    %61 = vector.shape_cast %60 : vector<1x128x128xbf16> to vector<128x128xbf16>
    %cst_73 = arith.constant dense<0.000000e+00> : vector<128x128xf32>
    %62 = tpu.matmul %59, %61, %cst_73 {dimension_numbers = #tpu.dot_dimension_numbers<[1], [0], [0], [1], [0, 0, 1, 1], [], []>} : vector<128x128xbf16>, vector<128x128xbf16>, vector<128x128xf32> -> vector<128x128xf32>
    %c0_74 = arith.constant 0 : index
    %c0_75 = arith.constant 0 : index
    %63 = vector.load %arg6[%c0_74, %c0_75] : memref<128x128xf32, #tpu.memory_space<vmem>>, vector<128x128xf32>
    %64 = arith.addf %63, %62 : vector<128x128xf32>
    %c0_76 = arith.constant 0 : index
    %c0_77 = arith.constant 0 : index
    %65 = vector.load %arg6[%c0_76, %c0_77] : memref<128x128xf32, #tpu.memory_space<vmem>>, vector<128x128xf32>
    tpu.vector_store %arg6[%c0_76, %c0_77], %64 {strides = array<i32>} : memref<128x128xf32, #tpu.memory_space<vmem>>, vector<128x128xf32>,
    %c32_78 = arith.constant 32 : index
    %c0_79 = arith.constant 0 : index
    %66 = vector.load %arg5[%c32_78, %c0_79] : memref<176x128xbf16, #tpu.memory_space<vmem>>, vector<128x128xbf16>
    %c6 = arith.constant 6 : index
    %c0_80 = arith.constant 0 : index
    %c0_81 = arith.constant 0 : index
    %67 = vector.load %arg2[%c6, %c0_80, %c0_81] : memref<9x128x128xbf16, #tpu.memory_space<vmem>>, vector<1x128x128xbf16>
    %68 = vector.shape_cast %67 : vector<1x128x128xbf16> to vector<128x128xbf16>
    %cst_82 = arith.constant dense<0.000000e+00> : vector<128x128xf32>
    %69 = tpu.matmul %66, %68, %cst_82 {dimension_numbers = #tpu.dot_dimension_numbers<[1], [0], [0], [1], [0, 0, 1, 1], [], []>} : vector<128x128xbf16>, vector<128x128xbf16>, vector<128x128xf32> -> vector<128x128xf32>
    %c0_83 = arith.constant 0 : index
    %c0_84 = arith.constant 0 : index
    %70 = vector.load %arg6[%c0_83, %c0_84] : memref<128x128xf32, #tpu.memory_space<vmem>>, vector<128x128xf32>
    %71 = arith.addf %70, %69 : vector<128x128xf32>
    %c0_85 = arith.constant 0 : index
    %c0_86 = arith.constant 0 : index
    %72 = vector.load %arg6[%c0_85, %c0_86] : memref<128x128xf32, #tpu.memory_space<vmem>>, vector<128x128xf32>
    tpu.vector_store %arg6[%c0_85, %c0_86], %71 {strides = array<i32>} : memref<128x128xf32, #tpu.memory_space<vmem>>, vector<128x128xf32>,
    %c33_87 = arith.constant 33 : index
    %c0_88 = arith.constant 0 : index
    %73 = vector.load %arg5[%c33_87, %c0_88] : memref<176x128xbf16, #tpu.memory_space<vmem>>, vector<128x128xbf16>
    %c7 = arith.constant 7 : index
    %c0_89 = arith.constant 0 : index
    %c0_90 = arith.constant 0 : index
    %74 = vector.load %arg2[%c7, %c0_89, %c0_90] : memref<9x128x128xbf16, #tpu.memory_space<vmem>>, vector<1x128x128xbf16>
    %75 = vector.shape_cast %74 : vector<1x128x128xbf16> to vector<128x128xbf16>
    %cst_91 = arith.constant dense<0.000000e+00> : vector<128x128xf32>
    %76 = tpu.matmul %73, %75, %cst_91 {dimension_numbers = #tpu.dot_dimension_numbers<[1], [0], [0], [1], [0, 0, 1, 1], [], []>} : vector<128x128xbf16>, vector<128x128xbf16>, vector<128x128xf32> -> vector<128x128xf32>
    %c0_92 = arith.constant 0 : index
    %c0_93 = arith.constant 0 : index
    %77 = vector.load %arg6[%c0_92, %c0_93] : memref<128x128xf32, #tpu.memory_space<vmem>>, vector<128x128xf32>
    %78 = arith.addf %77, %76 : vector<128x128xf32>
    %c0_94 = arith.constant 0 : index
    %c0_95 = arith.constant 0 : index
    %79 = vector.load %arg6[%c0_94, %c0_95] : memref<128x128xf32, #tpu.memory_space<vmem>>, vector<128x128xf32>
    tpu.vector_store %arg6[%c0_94, %c0_95], %78 {strides = array<i32>} : memref<128x128xf32, #tpu.memory_space<vmem>>, vector<128x128xf32>,
    %c34 = arith.constant 34 : index
    %c0_96 = arith.constant 0 : index
    %80 = vector.load %arg5[%c34, %c0_96] : memref<176x128xbf16, #tpu.memory_space<vmem>>, vector<128x128xbf16>
    %c8_97 = arith.constant 8 : index
    %c0_98 = arith.constant 0 : index
    %c0_99 = arith.constant 0 : index
    %81 = vector.load %arg2[%c8_97, %c0_98, %c0_99] : memref<9x128x128xbf16, #tpu.memory_space<vmem>>, vector<1x128x128xbf16>
    %82 = vector.shape_cast %81 : vector<1x128x128xbf16> to vector<128x128xbf16>
    %cst_100 = arith.constant dense<0.000000e+00> : vector<128x128xf32>
    %83 = tpu.matmul %80, %82, %cst_100 {dimension_numbers = #tpu.dot_dimension_numbers<[1], [0], [0], [1], [0, 0, 1, 1], [], []>} : vector<128x128xbf16>, vector<128x128xbf16>, vector<128x128xf32> -> vector<128x128xf32>
    %c0_101 = arith.constant 0 : index
    %c0_102 = arith.constant 0 : index
    %84 = vector.load %arg6[%c0_101, %c0_102] : memref<128x128xf32, #tpu.memory_space<vmem>>, vector<128x128xf32>
    %85 = arith.addf %84, %83 : vector<128x128xf32>
    %c0_103 = arith.constant 0 : index
    %c0_104 = arith.constant 0 : index
    %86 = vector.load %arg6[%c0_103, %c0_104] : memref<128x128xf32, #tpu.memory_space<vmem>>, vector<128x128xf32>
    tpu.vector_store %arg6[%c0_103, %c0_104], %85 {strides = array<i32>} : memref<128x128xf32, #tpu.memory_space<vmem>>, vector<128x128xf32>,
    %c0_105 = arith.constant 0 : index
    %c0_106 = arith.constant 0 : index
    %87 = vector.load %arg3[%c0_105, %c0_106] : memref<1x128xf32, #tpu.memory_space<vmem>>, vector<1x128xf32>
    %c0_107 = arith.constant 0 : index
    %c0_108 = arith.constant 0 : index
    %88 = vector.load %arg6[%c0_107, %c0_108] : memref<128x128xf32, #tpu.memory_space<vmem>>, vector<8x128xf32>
    %89 = vector.broadcast %87 : vector<1x128xf32> to vector<8x128xf32>
    %90 = arith.addf %88, %89 : vector<8x128xf32>
    %cst_109 = arith.constant 0.000000e+00 : f32
    %91 = vector.broadcast %cst_109 : f32 to vector<8x128xf32>
    %92 = arith.maximumf %90, %91 : vector<8x128xf32>
    %93 = arith.truncf %92 : vector<8x128xf32> to vector<8x128xbf16>
    %c0_110 = arith.constant 0 : index
    %c0_111 = arith.constant 0 : index
    %c0_112 = arith.constant 0 : index
    %94 = vector.load %arg4[%c0_110, %c0_111, %c0_112] : memref<1x64x128xbf16, #tpu.memory_space<vmem>>, vector<1x8x128xbf16>
    %95 = vector.shape_cast %94 : vector<1x8x128xbf16> to vector<8x128xbf16>
    %96 = vector.shape_cast %93 : vector<8x128xbf16> to vector<1x8x128xbf16>
    tpu.vector_store %arg4[%c0_110, %c0_111, %c0_112], %96 {strides = array<i32>} : memref<1x64x128xbf16, #tpu.memory_space<vmem>>, vector<1x8x128xbf16>,
    %c16_113 = arith.constant 16 : index
    %c0_114 = arith.constant 0 : index
    %97 = vector.load %arg6[%c16_113, %c0_114] : memref<128x128xf32, #tpu.memory_space<vmem>>, vector<8x128xf32>
    %98 = vector.broadcast %87 : vector<1x128xf32> to vector<8x128xf32>
    %99 = arith.addf %97, %98 : vector<8x128xf32>
    %cst_115 = arith.constant 0.000000e+00 : f32
    %100 = vector.broadcast %cst_115 : f32 to vector<8x128xf32>
    %101 = arith.maximumf %99, %100 : vector<8x128xf32>
    %102 = arith.truncf %101 : vector<8x128xf32> to vector<8x128xbf16>
    %c0_116 = arith.constant 0 : index
    %c8_117 = arith.constant 8 : index
    %c0_118 = arith.constant 0 : index
    %103 = vector.load %arg4[%c0_116, %c8_117, %c0_118] : memref<1x64x128xbf16, #tpu.memory_space<vmem>>, vector<1x8x128xbf16>
    %104 = vector.shape_cast %103 : vector<1x8x128xbf16> to vector<8x128xbf16>
    %105 = vector.shape_cast %102 : vector<8x128xbf16> to vector<1x8x128xbf16>
    tpu.vector_store %arg4[%c0_116, %c8_117, %c0_118], %105 {strides = array<i32>} : memref<1x64x128xbf16, #tpu.memory_space<vmem>>, vector<1x8x128xbf16>,
    %c32_119 = arith.constant 32 : index
    %c0_120 = arith.constant 0 : index
    %106 = vector.load %arg6[%c32_119, %c0_120] : memref<128x128xf32, #tpu.memory_space<vmem>>, vector<8x128xf32>
    %107 = vector.broadcast %87 : vector<1x128xf32> to vector<8x128xf32>
    %108 = arith.addf %106, %107 : vector<8x128xf32>
    %cst_121 = arith.constant 0.000000e+00 : f32
    %109 = vector.broadcast %cst_121 : f32 to vector<8x128xf32>
    %110 = arith.maximumf %108, %109 : vector<8x128xf32>
    %111 = arith.truncf %110 : vector<8x128xf32> to vector<8x128xbf16>
    %c0_122 = arith.constant 0 : index
    %c16_123 = arith.constant 16 : index
    %c0_124 = arith.constant 0 : index
    %112 = vector.load %arg4[%c0_122, %c16_123, %c0_124] : memref<1x64x128xbf16, #tpu.memory_space<vmem>>, vector<1x8x128xbf16>
    %113 = vector.shape_cast %112 : vector<1x8x128xbf16> to vector<8x128xbf16>
    %114 = vector.shape_cast %111 : vector<8x128xbf16> to vector<1x8x128xbf16>
    tpu.vector_store %arg4[%c0_122, %c16_123, %c0_124], %114 {strides = array<i32>} : memref<1x64x128xbf16, #tpu.memory_space<vmem>>, vector<1x8x128xbf16>,
    %c48_125 = arith.constant 48 : index
    %c0_126 = arith.constant 0 : index
    %115 = vector.load %arg6[%c48_125, %c0_126] : memref<128x128xf32, #tpu.memory_space<vmem>>, vector<8x128xf32>
    %116 = vector.broadcast %87 : vector<1x128xf32> to vector<8x128xf32>
    %117 = arith.addf %115, %116 : vector<8x128xf32>
    %cst_127 = arith.constant 0.000000e+00 : f32
    %118 = vector.broadcast %cst_127 : f32 to vector<8x128xf32>
    %119 = arith.maximumf %117, %118 : vector<8x128xf32>
    %120 = arith.truncf %119 : vector<8x128xf32> to vector<8x128xbf16>
    %c0_128 = arith.constant 0 : index
    %c24_129 = arith.constant 24 : index
    %c0_130 = arith.constant 0 : index
    %121 = vector.load %arg4[%c0_128, %c24_129, %c0_130] : memref<1x64x128xbf16, #tpu.memory_space<vmem>>, vector<1x8x128xbf16>
    %122 = vector.shape_cast %121 : vector<1x8x128xbf16> to vector<8x128xbf16>
    %123 = vector.shape_cast %120 : vector<8x128xbf16> to vector<1x8x128xbf16>
    tpu.vector_store %arg4[%c0_128, %c24_129, %c0_130], %123 {strides = array<i32>} : memref<1x64x128xbf16, #tpu.memory_space<vmem>>, vector<1x8x128xbf16>,
    %c64 = arith.constant 64 : index
    %c0_131 = arith.constant 0 : index
    %124 = vector.load %arg6[%c64, %c0_131] : memref<128x128xf32, #tpu.memory_space<vmem>>, vector<8x128xf32>
    %125 = vector.broadcast %87 : vector<1x128xf32> to vector<8x128xf32>
    %126 = arith.addf %124, %125 : vector<8x128xf32>
    %cst_132 = arith.constant 0.000000e+00 : f32
    %127 = vector.broadcast %cst_132 : f32 to vector<8x128xf32>
    %128 = arith.maximumf %126, %127 : vector<8x128xf32>
    %129 = arith.truncf %128 : vector<8x128xf32> to vector<8x128xbf16>
    %c0_133 = arith.constant 0 : index
    %c32_134 = arith.constant 32 : index
    %c0_135 = arith.constant 0 : index
    %130 = vector.load %arg4[%c0_133, %c32_134, %c0_135] : memref<1x64x128xbf16, #tpu.memory_space<vmem>>, vector<1x8x128xbf16>
    %131 = vector.shape_cast %130 : vector<1x8x128xbf16> to vector<8x128xbf16>
    %132 = vector.shape_cast %129 : vector<8x128xbf16> to vector<1x8x128xbf16>
    tpu.vector_store %arg4[%c0_133, %c32_134, %c0_135], %132 {strides = array<i32>} : memref<1x64x128xbf16, #tpu.memory_space<vmem>>, vector<1x8x128xbf16>,
    %c80 = arith.constant 80 : index
    %c0_136 = arith.constant 0 : index
    %133 = vector.load %arg6[%c80, %c0_136] : memref<128x128xf32, #tpu.memory_space<vmem>>, vector<8x128xf32>
    %134 = vector.broadcast %87 : vector<1x128xf32> to vector<8x128xf32>
    %135 = arith.addf %133, %134 : vector<8x128xf32>
    %cst_137 = arith.constant 0.000000e+00 : f32
    %136 = vector.broadcast %cst_137 : f32 to vector<8x128xf32>
    %137 = arith.maximumf %135, %136 : vector<8x128xf32>
    %138 = arith.truncf %137 : vector<8x128xf32> to vector<8x128xbf16>
    %c0_138 = arith.constant 0 : index
    %c40_139 = arith.constant 40 : index
    %c0_140 = arith.constant 0 : index
    %139 = vector.load %arg4[%c0_138, %c40_139, %c0_140] : memref<1x64x128xbf16, #tpu.memory_space<vmem>>, vector<1x8x128xbf16>
    %140 = vector.shape_cast %139 : vector<1x8x128xbf16> to vector<8x128xbf16>
    %141 = vector.shape_cast %138 : vector<8x128xbf16> to vector<1x8x128xbf16>
    tpu.vector_store %arg4[%c0_138, %c40_139, %c0_140], %141 {strides = array<i32>} : memref<1x64x128xbf16, #tpu.memory_space<vmem>>, vector<1x8x128xbf16>,
    %c96 = arith.constant 96 : index
    %c0_141 = arith.constant 0 : index
    %142 = vector.load %arg6[%c96, %c0_141] : memref<128x128xf32, #tpu.memory_space<vmem>>, vector<8x128xf32>
    %143 = vector.broadcast %87 : vector<1x128xf32> to vector<8x128xf32>
    %144 = arith.addf %142, %143 : vector<8x128xf32>
    %cst_142 = arith.constant 0.000000e+00 : f32
    %145 = vector.broadcast %cst_142 : f32 to vector<8x128xf32>
    %146 = arith.maximumf %144, %145 : vector<8x128xf32>
    %147 = arith.truncf %146 : vector<8x128xf32> to vector<8x128xbf16>
    %c0_143 = arith.constant 0 : index
    %c48_144 = arith.constant 48 : index
    %c0_145 = arith.constant 0 : index
    %148 = vector.load %arg4[%c0_143, %c48_144, %c0_145] : memref<1x64x128xbf16, #tpu.memory_space<vmem>>, vector<1x8x128xbf16>
    %149 = vector.shape_cast %148 : vector<1x8x128xbf16> to vector<8x128xbf16>
    %150 = vector.shape_cast %147 : vector<8x128xbf16> to vector<1x8x128xbf16>
    tpu.vector_store %arg4[%c0_143, %c48_144, %c0_145], %150 {strides = array<i32>} : memref<1x64x128xbf16, #tpu.memory_space<vmem>>, vector<1x8x128xbf16>,
    %c112 = arith.constant 112 : index
    %c0_146 = arith.constant 0 : index
    %151 = vector.load %arg6[%c112, %c0_146] : memref<128x128xf32, #tpu.memory_space<vmem>>, vector<8x128xf32>
    %152 = vector.broadcast %87 : vector<1x128xf32> to vector<8x128xf32>
    %153 = arith.addf %151, %152 : vector<8x128xf32>
    %cst_147 = arith.constant 0.000000e+00 : f32
    %154 = vector.broadcast %cst_147 : f32 to vector<8x128xf32>
    %155 = arith.maximumf %153, %154 : vector<8x128xf32>
    %156 = arith.truncf %155 : vector<8x128xf32> to vector<8x128xbf16>
    %c0_148 = arith.constant 0 : index
    %c56_149 = arith.constant 56 : index
    %c0_150 = arith.constant 0 : index
    %157 = vector.load %arg4[%c0_148, %c56_149, %c0_150] : memref<1x64x128xbf16, #tpu.memory_space<vmem>>, vector<1x8x128xbf16>
    %158 = vector.shape_cast %157 : vector<1x8x128xbf16> to vector<8x128xbf16>
    %159 = vector.shape_cast %156 : vector<8x128xbf16> to vector<1x8x128xbf16>
    tpu.vector_store %arg4[%c0_148, %c56_149, %c0_150], %159 {strides = array<i32>} : memref<1x64x128xbf16, #tpu.memory_space<vmem>>, vector<1x8x128xbf16>,
    return
  }
  func.func @transform_0(%arg0: i32) -> (i32, i32, i32) {
    %c0_i32 = arith.constant 0 : i32
    %c0_i32_0 = arith.constant 0 : i32
    %c0_i32_1 = arith.constant 0 : i32
    return %arg0, %c0_i32, %c0_i32_0 : i32, i32, i32
  }
  func.func @transform_1(%arg0: i32) -> (i32, i32, i32) {
    %c0_i32 = arith.constant 0 : i32
    %c0_i32_0 = arith.constant 0 : i32
    %c0_i32_1 = arith.constant 0 : i32
    %c0_i32_2 = arith.constant 0 : i32
    return %c0_i32, %c0_i32_0, %c0_i32_1 : i32, i32, i32
  }
  func.func @transform_2(%arg0: i32) -> (i32, i32) {
    %c0_i32 = arith.constant 0 : i32
    %c0_i32_0 = arith.constant 0 : i32
    %c0_i32_1 = arith.constant 0 : i32
    return %c0_i32, %c0_i32_0 : i32, i32
  }
  func.func @transform_3(%arg0: i32) -> (i32, i32, i32) {
    %c0_i32 = arith.constant 0 : i32
    %c0_i32_0 = arith.constant 0 : i32
    %c0_i32_1 = arith.constant 0 : i32
    return %arg0, %c0_i32, %c0_i32_0 : i32, i32, i32
  }
}

module attributes {stable_mosaic.version = 11 : i64} {
  func.func @_mm_bias_relu_kernel(%arg0: i32, %arg1: memref<128x128xbf16, #tpu.memory_space<vmem>>, %arg2: memref<128x128xbf16, #tpu.memory_space<vmem>>, %arg3: memref<1x128xf32, #tpu.memory_space<vmem>>, %arg4: memref<128x128xbf16, #tpu.memory_space<vmem>>) attributes {dimension_semantics = [#tpu.dimension_semantics<parallel>], iteration_bounds = array<i64: 1>, scalar_prefetch = 0 : i64, scratch_operands = 0 : i64, tpu.core_type = #tpu.core_type<tc>, window_params = [{transform_indices = @transform_0, window_bounds = array<i64: 128, 128>}, {pipeline_mode = #tpu.pipeline_mode<synchronous>, transform_indices = @transform_1, window_bounds = array<i64: 128, 128>}, {pipeline_mode = #tpu.pipeline_mode<synchronous>, transform_indices = @transform_2, window_bounds = array<i64: 1, 128>}, {transform_indices = @transform_3, window_bounds = array<i64: 128, 128>}]} {
    %c0 = arith.constant 0 : index
    %c0_0 = arith.constant 0 : index
    %0 = vector.load %arg1[%c0, %c0_0] : memref<128x128xbf16, #tpu.memory_space<vmem>>, vector<128x128xbf16>
    %c0_1 = arith.constant 0 : index
    %c0_2 = arith.constant 0 : index
    %1 = vector.load %arg2[%c0_1, %c0_2] : memref<128x128xbf16, #tpu.memory_space<vmem>>, vector<128x128xbf16>
    %cst = arith.constant dense<0.000000e+00> : vector<128x128xf32>
    %2 = tpu.matmul %0, %1, %cst {dimension_numbers = #tpu.dot_dimension_numbers<[1], [0], [0], [1], [0, 0, 1, 1], [], []>} : vector<128x128xbf16>, vector<128x128xbf16>, vector<128x128xf32> -> vector<128x128xf32>
    %c0_3 = arith.constant 0 : index
    %c0_4 = arith.constant 0 : index
    %3 = vector.load %arg3[%c0_3, %c0_4] : memref<1x128xf32, #tpu.memory_space<vmem>>, vector<1x128xf32>
    %4 = vector.broadcast %3 : vector<1x128xf32> to vector<128x128xf32>
    %5 = arith.addf %2, %4 : vector<128x128xf32>
    %cst_5 = arith.constant 0.000000e+00 : f32
    %6 = vector.broadcast %cst_5 : f32 to vector<128x128xf32>
    %7 = arith.maximumf %5, %6 : vector<128x128xf32>
    %8 = arith.truncf %7 : vector<128x128xf32> to vector<128x128xbf16>
    %c0_6 = arith.constant 0 : index
    %c0_7 = arith.constant 0 : index
    %9 = vector.load %arg4[%c0_6, %c0_7] : memref<128x128xbf16, #tpu.memory_space<vmem>>, vector<128x128xbf16>
    tpu.vector_store %arg4[%c0_6, %c0_7], %8 {strides = array<i32>} : memref<128x128xbf16, #tpu.memory_space<vmem>>, vector<128x128xbf16>,
    return
  }
  func.func @transform_0(%arg0: i32) -> (i32, i32) {
    %c0_i32 = arith.constant 0 : i32
    %c0_i32_0 = arith.constant 0 : i32
    return %arg0, %c0_i32 : i32, i32
  }
  func.func @transform_1(%arg0: i32) -> (i32, i32) {
    %c0_i32 = arith.constant 0 : i32
    %c0_i32_0 = arith.constant 0 : i32
    %c0_i32_1 = arith.constant 0 : i32
    return %c0_i32, %c0_i32_0 : i32, i32
  }
  func.func @transform_2(%arg0: i32) -> (i32, i32) {
    %c0_i32 = arith.constant 0 : i32
    %c0_i32_0 = arith.constant 0 : i32
    %c0_i32_1 = arith.constant 0 : i32
    return %c0_i32, %c0_i32_0 : i32, i32
  }
  func.func @transform_3(%arg0: i32) -> (i32, i32) {
    %c0_i32 = arith.constant 0 : i32
    %c0_i32_0 = arith.constant 0 : i32
    return %arg0, %c0_i32 : i32, i32
  }
}

module attributes {stable_mosaic.version = 11 : i64} {
  func.func @_mm_bias_res_relu_kernel(%arg0: i32, %arg1: memref<128x128xbf16, #tpu.memory_space<vmem>>, %arg2: memref<128x128xbf16, #tpu.memory_space<vmem>>, %arg3: memref<1x128xf32, #tpu.memory_space<vmem>>, %arg4: memref<128x128xbf16, #tpu.memory_space<vmem>>, %arg5: memref<128x128xbf16, #tpu.memory_space<vmem>>) attributes {dimension_semantics = [#tpu.dimension_semantics<parallel>], iteration_bounds = array<i64: 1>, scalar_prefetch = 0 : i64, scratch_operands = 0 : i64, tpu.core_type = #tpu.core_type<tc>, window_params = [{transform_indices = @transform_0, window_bounds = array<i64: 128, 128>}, {pipeline_mode = #tpu.pipeline_mode<synchronous>, transform_indices = @transform_1, window_bounds = array<i64: 128, 128>}, {pipeline_mode = #tpu.pipeline_mode<synchronous>, transform_indices = @transform_2, window_bounds = array<i64: 1, 128>}, {transform_indices = @transform_3, window_bounds = array<i64: 128, 128>}, {transform_indices = @transform_4, window_bounds = array<i64: 128, 128>}]} {
    %c0 = arith.constant 0 : index
    %c0_0 = arith.constant 0 : index
    %0 = vector.load %arg1[%c0, %c0_0] : memref<128x128xbf16, #tpu.memory_space<vmem>>, vector<128x128xbf16>
    %c0_1 = arith.constant 0 : index
    %c0_2 = arith.constant 0 : index
    %1 = vector.load %arg2[%c0_1, %c0_2] : memref<128x128xbf16, #tpu.memory_space<vmem>>, vector<128x128xbf16>
    %cst = arith.constant dense<0.000000e+00> : vector<128x128xf32>
    %2 = tpu.matmul %0, %1, %cst {dimension_numbers = #tpu.dot_dimension_numbers<[1], [0], [0], [1], [0, 0, 1, 1], [], []>} : vector<128x128xbf16>, vector<128x128xbf16>, vector<128x128xf32> -> vector<128x128xf32>
    %c0_3 = arith.constant 0 : index
    %c0_4 = arith.constant 0 : index
    %3 = vector.load %arg3[%c0_3, %c0_4] : memref<1x128xf32, #tpu.memory_space<vmem>>, vector<1x128xf32>
    %4 = vector.broadcast %3 : vector<1x128xf32> to vector<128x128xf32>
    %5 = arith.addf %2, %4 : vector<128x128xf32>
    %c0_5 = arith.constant 0 : index
    %c0_6 = arith.constant 0 : index
    %6 = vector.load %arg4[%c0_5, %c0_6] : memref<128x128xbf16, #tpu.memory_space<vmem>>, vector<128x128xbf16>
    %7 = arith.extf %6 : vector<128x128xbf16> to vector<128x128xf32>
    %8 = arith.addf %5, %7 : vector<128x128xf32>
    %cst_7 = arith.constant 0.000000e+00 : f32
    %9 = vector.broadcast %cst_7 : f32 to vector<128x128xf32>
    %10 = arith.maximumf %8, %9 : vector<128x128xf32>
    %11 = arith.truncf %10 : vector<128x128xf32> to vector<128x128xbf16>
    %c0_8 = arith.constant 0 : index
    %c0_9 = arith.constant 0 : index
    %12 = vector.load %arg5[%c0_8, %c0_9] : memref<128x128xbf16, #tpu.memory_space<vmem>>, vector<128x128xbf16>
    tpu.vector_store %arg5[%c0_8, %c0_9], %11 {strides = array<i32>} : memref<128x128xbf16, #tpu.memory_space<vmem>>, vector<128x128xbf16>,
    return
  }
  func.func @transform_0(%arg0: i32) -> (i32, i32) {
    %c0_i32 = arith.constant 0 : i32
    %c0_i32_0 = arith.constant 0 : i32
    return %arg0, %c0_i32 : i32, i32
  }
  func.func @transform_1(%arg0: i32) -> (i32, i32) {
    %c0_i32 = arith.constant 0 : i32
    %c0_i32_0 = arith.constant 0 : i32
    %c0_i32_1 = arith.constant 0 : i32
    return %c0_i32, %c0_i32_0 : i32, i32
  }
  func.func @transform_2(%arg0: i32) -> (i32, i32) {
    %c0_i32 = arith.constant 0 : i32
    %c0_i32_0 = arith.constant 0 : i32
    %c0_i32_1 = arith.constant 0 : i32
    return %c0_i32, %c0_i32_0 : i32, i32
  }
  func.func @transform_3(%arg0: i32) -> (i32, i32) {
    %c0_i32 = arith.constant 0 : i32
    %c0_i32_0 = arith.constant 0 : i32
    return %arg0, %c0_i32 : i32, i32
  }
  func.func @transform_4(%arg0: i32) -> (i32, i32) {
    %c0_i32 = arith.constant 0 : i32
    %c0_i32_0 = arith.constant 0 : i32
    return %arg0, %c0_i32 : i32, i32
  }
}

</mosaic_0001>

<bundles_post_ra>
// kernel: bottleneck_forward.5
= control target key start
LH: loop header
LB: loop body
LE: loop exit
PB: predicated region body
PF: predicated region fallthrough
CT: control target
= control target key end

     0   :  { %s771_s1 = inlined_call_operand.vmem [shape: bf16[128,128], index: 1, kind: input, shape index: {}]   ;;  %s772_s0 = inlined_call_operand.vmem [shape: bf16[128,128], index: 0, kind: input, shape index: {}]   ;;  %s773_s2 = inlined_call_operand.vmem [shape: f32[1,128], index: 2, kind: input, shape index: {}]   ;;  %s774_s3 = inlined_call_operand.vmem [shape: bf16[128,128], index: 3, kind: input, shape index: {}]   ;;  %s775_s4 = inlined_call_operand.vmem [shape: bf16[128,128], index: 4, kind: output, shape index: {}]  }
   0x1   :  { %v597_v0 = vld [vmem:[%s771_s1 + $0x38] sm:$0xff]   ;;  %v598_v1 = vld [vmem:[%s771_s1 + $0x30] sm:$0xff]   ;;  %v599_v2 = vld [vmem:[%s771_s1 + $0x28] sm:$0xff]  }
   0x2   :  { %549 = vmatprep.subr.bf16.mxu0 %v597_v0  ;;  %581 = vmatprep.subr.bf16.mxu1 %v597_v0  ;;  %v600_v3 = vld [vmem:[%s771_s1 + $0x20] sm:$0xff]   ;;  %v601_v6 = vld [vmem:[%s771_s1 + $0x18] sm:$0xff]   ;;  %v602_v7 = vld [vmem:[%s771_s1 + $0x10] sm:$0xff]  }
   0x3   :  { %550 = vmatpush3.bf16.msra.mxu0 %v597_v0  ;;  %589 = vmatpush3.bf16.msra.mxu1 %v597_v0  ;;  %v605_v4 = vld [vmem:[%s772_s0] sm:$0xff]   ;;  %v603_v8 = vld [vmem:[%s771_s1 + $0x8] sm:$0xff]   ;;  %v609_v12 = vld [vmem:[%s772_s0 + $0x10] sm:$0xff]  }
   0x4   :  { %551 = vmatprep.subr.bf16.mxu0 %v598_v1  ;;  %582 = vmatprep.subr.bf16.mxu1 %v598_v1  ;;  %v606_v5 = vld [vmem:[%s772_s0 + $0x20] sm:$0xff]   ;;  %v607_v10 = vld [vmem:[%s772_s0 + $0x8] sm:$0xff]   ;;  %v610_v13 = vld [vmem:[%s772_s0 + $0x30] sm:$0xff]  }
   0x5   :  { %565 = vmatprep.mubr.bf16.mxu0 %v605_v4  ;;  %573 = vmatprep.mubr.bf16.mxu1 %v606_v5  ;;  %v604_v9 = vld [vmem:[%s771_s1] sm:$0xff]   ;;  %v608_v11 = vld [vmem:[%s772_s0 + $0x28] sm:$0xff]   ;;  %v611_v14 = vld [vmem:[%s772_s0 + $0x18] sm:$0xff]  }
   0x6   :  { %v612_v15 = vld [vmem:[%s772_s0 + $0x38] sm:$0xff]   ;;  %v689_v16 = vld [vmem:[%s773_s2] ss:$0 sm:$0xff]  ;;  %v519_v17 = vld [vmem:[%s774_s3 + $0x8] sm:$0xff]  }
   0x7   :  { %552 = vmatpush3.bf16.msra.mxu0 %v598_v1  ;;  %590 = vmatpush3.bf16.msra.mxu1 %v598_v1  ;;  %v523_v18 = vld [vmem:[%s774_s3 + $0x28] sm:$0xff]   ;;  %v448_v21 = vld [vmem:[%s774_s3] sm:$0xff]   ;;  %v453_v24 = vunpack.c.l.bf16 %v519_v17  ;;  %v708_v29 = vld [vmem:[%s774_s3 + $0x18] sm:$0xff]   ;;  %v454_v38 = vunpack.c.h.bf16 %v519_v17 }
   0x8   :  { %553 = vmatprep.subr.bf16.mxu0 %v599_v2  ;;  %583 = vmatprep.subr.bf16.mxu1 %v599_v2  ;;  %v522_v22 = vld [vmem:[%s774_s3 + $0x20] sm:$0xff]   ;;  %v469_v26 = vunpack.c.l.bf16 %v523_v18  ;;  %v713_v30 = vld [vmem:[%s774_s3 + $0x38] sm:$0xff]   ;;  %v449_v32 = vunpack.c.l.bf16 %v448_v21  ;;  %v720_v35 = vld [vmem:[%s774_s3 + $0x10] sm:$0xff]   ;;  %v470_v40 = vunpack.c.h.bf16 %v523_v18  ;;  %v450_v41 = vunpack.c.h.bf16 %v448_v21 }
   0x9   :  { %v465_v34 = vunpack.c.l.bf16 %v522_v22  ;;  %v725_v36 = vld [vmem:[%s774_s3 + $0x30] sm:$0xff]   ;;  %v466_v42 = vunpack.c.h.bf16 %v522_v22  ;;  %v461_v45 = vunpack.c.l.bf16 %v708_v29  ;;  %v477_v46 = vunpack.c.l.bf16 %v713_v30 }
   0xa   :  { %v457_v51 = vunpack.c.l.bf16 %v720_v35  ;;  %v473_v52 = vunpack.c.l.bf16 %v725_v36  ;;  %v462_v61 = vunpack.c.h.bf16 %v708_v29  ;;  %v478_v62 = vunpack.c.h.bf16 %v713_v30 }
   0xb   :  { %554 = vmatpush3.bf16.msra.mxu0 %v599_v2  ;;  %591 = vmatpush3.bf16.msra.mxu1 %v599_v2  ;;  %v458_v22 = vunpack.c.h.bf16 %v720_v35 }
   0xc   :  { %555 = vmatprep.subr.bf16.mxu0 %v600_v3  ;;  %584 = vmatprep.subr.bf16.mxu1 %v600_v3 }
   0xf   :  { %556 = vmatpush3.bf16.msra.mxu0 %v600_v3  ;;  %592 = vmatpush3.bf16.msra.mxu1 %v600_v3 }
  0x10   :  { %557 = vmatprep.subr.bf16.mxu0 %v601_v6  ;;  %585 = vmatprep.subr.bf16.mxu1 %v601_v6 }
  0x13   :  { %558 = vmatpush3.bf16.msra.mxu0 %v601_v6  ;;  %593 = vmatpush3.bf16.msra.mxu1 %v601_v6 }
  0x14   :  { %559 = vmatprep.subr.bf16.mxu0 %v602_v7  ;;  %586 = vmatprep.subr.bf16.mxu1 %v602_v7 }
  0x17   :  { %560 = vmatpush3.bf16.msra.mxu0 %v602_v7  ;;  %594 = vmatpush3.bf16.msra.mxu1 %v602_v7 }
  0x18   :  { %561 = vmatprep.subr.bf16.mxu0 %v603_v8  ;;  %587 = vmatprep.subr.bf16.mxu1 %v603_v8 }
  0x1b   :  { %562 = vmatpush3.bf16.msra.mxu0 %v603_v8  ;;  %595 = vmatpush3.bf16.msra.mxu1 %v603_v8 }
  0x1c   :  { %563 = vmatprep.subr.bf16.mxu0 %v604_v9  ;;  %588 = vmatprep.subr.bf16.mxu1 %v604_v9 }
  0x1f   :  { %564 = vmatpush3.bf16.msra.mxu0 %v604_v9  ;;  %596 = vmatpush3.bf16.msra.mxu1 %v604_v9 }
  0x22   :  { %566 = vmatmul.mubr.bf16.vlgmr.msra.gmra.mxu0 %v607_v10  ;;  %574 = vmatmul.mubr.bf16.vlgmr.msra.gmra.mxu1 %v608_v11 }
  0x23   :  { %569 = vmatprep.mubr.bf16.mxu0 %v609_v12  ;;  %577 = vmatprep.mubr.bf16.mxu1 %v610_v13 }
  0x2a   :  { %570 = vmatmul.mubr.bf16.gmra.mxu0 %v611_v14  ;;  %578 = vmatmul.mubr.bf16.gmra.mxu1 %v612_v15 }
  0xe2   :  { %v567_v19 = vpop.f32.mrf.mxu0  ;;  %v575_v20 = vpop.f32.mrf.mxu1 }
  0xe3   :  { %v196_v23 = vadd.f32 %v567_v19, %v689_v16  ;;  %v228_v25 = vadd.f32 %v575_v20, %v689_v16 }
  0xe4   :  { %v187_v27 = vpop.f32.mrf.mxu0  ;;  %v219_v28 = vpop.f32.mrf.mxu1 }
  0xe5   :  { %v188_v31 = vadd.f32 %v689_v16, %v187_v27  ;;  %v220_v33 = vadd.f32 %v689_v16, %v219_v28  ;;  %v284_v43 = vadd.f32 %v453_v24, %v196_v23  ;;  %v292_v44 = vadd.f32 %v469_v26, %v228_v25 }
  0xe6   :  { %v568_v37 = vpop.f32.mrf.mxu0  ;;  %v576_v39 = vpop.f32.mrf.mxu1  ;;  %v474_v23 = vunpack.c.h.bf16 %v725_v36 }
  0xe7   :  { %v199_v47 = vadd.f32 %v568_v37, %v689_v16  ;;  %v231_v48 = vadd.f32 %v576_v39, %v689_v16  ;;  %v282_v53 = vadd.f32 %v449_v32, %v188_v31  ;;  %v290_v54 = vadd.f32 %v465_v34, %v220_v33 }
  0xe8   :  { %v190_v49 = vpop.f32.mrf.mxu0  ;;  %v222_v50 = vpop.f32.mrf.mxu1  ;;  %v300_v63 = vmax.f32 %v284_v43, 0.0  ;;  %v308_v0 = vmax.f32 %v292_v44, 0.0 }
  0xe9   :  { %v191_v55 = vadd.f32 %v689_v16, %v190_v49  ;;  %v223_v56 = vadd.f32 %v689_v16, %v222_v50  ;;  %v285_v57 = vadd.f32 %v454_v38, %v199_v47  ;;  %v293_v58 = vadd.f32 %v470_v40, %v231_v48 }
  0xea   :  { %v571_v59 = vpop.f32.mrf.mxu0  ;;  %v579_v60 = vpop.f32.mrf.mxu1  ;;  %v298_v9 = vmax.f32 %v282_v53, 0.0  ;;  %v306_v10 = vmax.f32 %v290_v54, 0.0 }
  0xeb   :  { %v283_v1 = vadd.f32 %v450_v41, %v191_v55  ;;  %v291_v2 = vadd.f32 %v466_v42, %v223_v56  ;;  %v301_v3 = vmax.f32 %v285_v57, 0.0  ;;  %v309_v4 = vmax.f32 %v293_v58, 0.0 }
  0xec   :  { %v212_v5 = vadd.f32 %v571_v59, %v689_v16  ;;  %v244_v6 = vadd.f32 %v579_v60, %v689_v16  ;;  %v203_v7 = vpop.f32.mrf.mxu0  ;;  %v235_v8 = vpop.f32.mrf.mxu1 }
  0xed   :  { %v299_v11 = vmax.f32 %v283_v1, 0.0  ;;  %v307_v12 = vmax.f32 %v291_v2, 0.0  ;;  %v487_v13 = vpack.c.bf16 %v301_v3, %v300_v63  ;;  %v507_v14 = vpack.c.bf16 %v309_v4, %v308_v0 }
  0xee   :  { %v204_v15 = vadd.f32 %v689_v16, %v203_v7  ;;  %v236_v17 = vadd.f32 %v689_v16, %v235_v8  ;;  %v572_v18 = vpop.f32.mrf.mxu0  ;;  %v580_v19 = vpop.f32.mrf.mxu1  ;;  %v288_v24 = vadd.f32 %v461_v45, %v212_v5  ;;  %v296_v25 = vadd.f32 %v477_v46, %v244_v6 }
  0xef   :  { %v482_v20 = vpack.c.bf16 %v299_v11, %v298_v9  ;;  %v502_v21 = vpack.c.bf16 %v307_v12, %v306_v10  ;;  %526 = vst [vmem:[%s775_s4 + $0x8] sm:$0xff] %v487_v13   ;;  %530 = vst [vmem:[%s775_s4 + $0x28] sm:$0xff] %v507_v14   ;;  %v215_v26 = vadd.f32 %v572_v18, %v689_v16 }
  0xf0   :  { %v247_v27 = vadd.f32 %v580_v19, %v689_v16  ;;  %v206_v28 = vpop.f32.mrf.mxu0  ;;  %v238_v29 = vpop.f32.mrf.mxu1  ;;  %v286_v30 = vadd.f32 %v457_v51, %v204_v15  ;;  %v294_v31 = vadd.f32 %v473_v52, %v236_v17  ;;  %v304_v38 = vmax.f32 %v288_v24, 0.0 }
  0xf1   :  { %483 = vst [vmem:[%s775_s4] sm:$0xff] %v482_v20   ;;  %529 = vst [vmem:[%s775_s4 + $0x20] sm:$0xff] %v502_v21   ;;  %v207_v32 = vadd.f32 %v689_v16, %v206_v28  ;;  %v239_v33 = vadd.f32 %v689_v16, %v238_v29  ;;  %v289_v34 = vadd.f32 %v462_v61, %v215_v26  ;;  %v312_v39 = vmax.f32 %v296_v25, 0.0 }
  0xf2   :  { %v297_v35 = vadd.f32 %v478_v62, %v247_v27  ;;  %v302_v42 = vmax.f32 %v286_v30, 0.0  ;;  %v310_v43 = vmax.f32 %v294_v31, 0.0 }
  0xf3   :  { %v287_v36 = vadd.f32 %v458_v22, %v207_v32  ;;  %v295_v37 = vadd.f32 %v474_v23, %v239_v33  ;;  %v305_v40 = vmax.f32 %v289_v34, 0.0 }
  0xf4   :  { %v313_v41 = vmax.f32 %v297_v35, 0.0 }
  0xf5   :  { %v303_v44 = vmax.f32 %v287_v36, 0.0  ;;  %v311_v45 = vmax.f32 %v295_v37, 0.0  ;;  %v497_v46 = vpack.c.bf16 %v305_v40, %v304_v38 }
  0xf6   :  { %v517_v47 = vpack.c.bf16 %v313_v41, %v312_v39 }
  0xf7   :  { %v492_v48 = vpack.c.bf16 %v303_v44, %v302_v42  ;;  %v512_v49 = vpack.c.bf16 %v311_v45, %v310_v43  ;;  %528 = vst [vmem:[%s775_s4 + $0x18] sm:$0xff] %v497_v46  }
  0xf8   :  { %532 = vst [vmem:[%s775_s4 + $0x38] sm:$0xff] %v517_v47  }
  0xf9   :  { %527 = vst [vmem:[%s775_s4 + $0x10] sm:$0xff] %v492_v48   ;;  %531 = vst [vmem:[%s775_s4 + $0x30] sm:$0xff] %v512_v49  }

// kernel: bottleneck_forward.3
= control target key start
LH: loop header
LB: loop body
LE: loop exit
PB: predicated region body
PF: predicated region fallthrough
CT: control target
= control target key end

     0   :  { %s618_s1 = inlined_call_operand.vmem [shape: bf16[128,128], index: 1, kind: input, shape index: {}]   ;;  %s619_s0 = inlined_call_operand.vmem [shape: bf16[128,128], index: 0, kind: input, shape index: {}]   ;;  %s620_s2 = inlined_call_operand.vmem [shape: f32[1,128], index: 2, kind: input, shape index: {}]   ;;  %s621_s3 = inlined_call_operand.vmem [shape: bf16[128,128], index: 3, kind: output, shape index: {}]  }
   0x1   :  { %v507_v0 = vld [vmem:[%s618_s1 + $0x38] sm:$0xff]   ;;  %v508_v1 = vld [vmem:[%s618_s1 + $0x30] sm:$0xff]   ;;  %v509_v2 = vld [vmem:[%s618_s1 + $0x28] sm:$0xff]  }
   0x2   :  { %459 = vmatprep.subr.bf16.mxu0 %v507_v0  ;;  %491 = vmatprep.subr.bf16.mxu1 %v507_v0  ;;  %v510_v3 = vld [vmem:[%s618_s1 + $0x20] sm:$0xff]   ;;  %v511_v6 = vld [vmem:[%s618_s1 + $0x18] sm:$0xff]   ;;  %v512_v7 = vld [vmem:[%s618_s1 + $0x10] sm:$0xff]  }
   0x3   :  { %460 = vmatpush3.bf16.msra.mxu0 %v507_v0  ;;  %499 = vmatpush3.bf16.msra.mxu1 %v507_v0  ;;  %v515_v4 = vld [vmem:[%s619_s0] sm:$0xff]   ;;  %v513_v8 = vld [vmem:[%s618_s1 + $0x8] sm:$0xff]   ;;  %v519_v12 = vld [vmem:[%s619_s0 + $0x10] sm:$0xff]  }
   0x4   :  { %461 = vmatprep.subr.bf16.mxu0 %v508_v1  ;;  %492 = vmatprep.subr.bf16.mxu1 %v508_v1  ;;  %v516_v5 = vld [vmem:[%s619_s0 + $0x20] sm:$0xff]   ;;  %v517_v10 = vld [vmem:[%s619_s0 + $0x8] sm:$0xff]   ;;  %v520_v13 = vld [vmem:[%s619_s0 + $0x30] sm:$0xff]  }
   0x5   :  { %475 = vmatprep.mubr.bf16.mxu0 %v515_v4  ;;  %483 = vmatprep.mubr.bf16.mxu1 %v516_v5  ;;  %v514_v9 = vld [vmem:[%s618_s1] sm:$0xff]   ;;  %v518_v11 = vld [vmem:[%s619_s0 + $0x28] sm:$0xff]   ;;  %v521_v14 = vld [vmem:[%s619_s0 + $0x18] sm:$0xff]  }
   0x6   :  { %v522_v15 = vld [vmem:[%s619_s0 + $0x38] sm:$0xff]   ;;  %v347_v16 = vld [vmem:[%s620_s2] ss:$0 sm:$0xff] }
   0x7   :  { %462 = vmatpush3.bf16.msra.mxu0 %v508_v1  ;;  %500 = vmatpush3.bf16.msra.mxu1 %v508_v1 }
   0x8   :  { %463 = vmatprep.subr.bf16.mxu0 %v509_v2  ;;  %493 = vmatprep.subr.bf16.mxu1 %v509_v2 }
   0xb   :  { %464 = vmatpush3.bf16.msra.mxu0 %v509_v2  ;;  %501 = vmatpush3.bf16.msra.mxu1 %v509_v2 }
   0xc   :  { %465 = vmatprep.subr.bf16.mxu0 %v510_v3  ;;  %494 = vmatprep.subr.bf16.mxu1 %v510_v3 }
   0xf   :  { %466 = vmatpush3.bf16.msra.mxu0 %v510_v3  ;;  %502 = vmatpush3.bf16.msra.mxu1 %v510_v3 }
  0x10   :  { %467 = vmatprep.subr.bf16.mxu0 %v511_v6  ;;  %495 = vmatprep.subr.bf16.mxu1 %v511_v6 }
  0x13   :  { %468 = vmatpush3.bf16.msra.mxu0 %v511_v6  ;;  %503 = vmatpush3.bf16.msra.mxu1 %v511_v6 }
  0x14   :  { %469 = vmatprep.subr.bf16.mxu0 %v512_v7  ;;  %496 = vmatprep.subr.bf16.mxu1 %v512_v7 }
  0x17   :  { %470 = vmatpush3.bf16.msra.mxu0 %v512_v7  ;;  %504 = vmatpush3.bf16.msra.mxu1 %v512_v7 }
  0x18   :  { %471 = vmatprep.subr.bf16.mxu0 %v513_v8  ;;  %497 = vmatprep.subr.bf16.mxu1 %v513_v8 }
  0x1b   :  { %472 = vmatpush3.bf16.msra.mxu0 %v513_v8  ;;  %505 = vmatpush3.bf16.msra.mxu1 %v513_v8 }
  0x1c   :  { %473 = vmatprep.subr.bf16.mxu0 %v514_v9  ;;  %498 = vmatprep.subr.bf16.mxu1 %v514_v9 }
  0x1f   :  { %474 = vmatpush3.bf16.msra.mxu0 %v514_v9  ;;  %506 = vmatpush3.bf16.msra.mxu1 %v514_v9 }
  0x22   :  { %476 = vmatmul.mubr.bf16.vlgmr.msra.gmra.mxu0 %v517_v10  ;;  %484 = vmatmul.mubr.bf16.vlgmr.msra.gmra.mxu1 %v518_v11 }
  0x23   :  { %479 = vmatprep.mubr.bf16.mxu0 %v519_v12  ;;  %487 = vmatprep.mubr.bf16.mxu1 %v520_v13 }
  0x2a   :  { %480 = vmatmul.mubr.bf16.gmra.mxu0 %v521_v14  ;;  %488 = vmatmul.mubr.bf16.gmra.mxu1 %v522_v15 }
  0xe2   :  { %v477_v17 = vpop.f32.mrf.mxu0  ;;  %v485_v18 = vpop.f32.mrf.mxu1 }
  0xe3   :  { %v193_v19 = vadd.f32 %v477_v17, %v347_v16  ;;  %v225_v20 = vadd.f32 %v485_v18, %v347_v16 }
  0xe4   :  { %v184_v21 = vpop.f32.mrf.mxu0  ;;  %v216_v22 = vpop.f32.mrf.mxu1 }
  0xe5   :  { %v185_v23 = vadd.f32 %v347_v16, %v184_v21  ;;  %v217_v24 = vadd.f32 %v347_v16, %v216_v22  ;;  %v249_v29 = vmax.f32 %v193_v19, 0.0  ;;  %v257_v30 = vmax.f32 %v225_v20, 0.0 }
  0xe6   :  { %v478_v25 = vpop.f32.mrf.mxu0  ;;  %v486_v26 = vpop.f32.mrf.mxu1 }
  0xe7   :  { %v196_v27 = vadd.f32 %v478_v25, %v347_v16  ;;  %v228_v28 = vadd.f32 %v486_v26, %v347_v16  ;;  %v247_v37 = vmax.f32 %v185_v23, 0.0  ;;  %v255_v38 = vmax.f32 %v217_v24, 0.0 }
  0xe8   :  { %v187_v31 = vpop.f32.mrf.mxu0  ;;  %v219_v32 = vpop.f32.mrf.mxu1 }
  0xe9   :  { %v250_v33 = vmax.f32 %v196_v27, 0.0  ;;  %v258_v34 = vmax.f32 %v228_v28, 0.0  ;;  %v188_v35 = vadd.f32 %v347_v16, %v187_v31  ;;  %v220_v36 = vadd.f32 %v347_v16, %v219_v32 }
  0xea   :  { %v481_v39 = vpop.f32.mrf.mxu0  ;;  %v489_v40 = vpop.f32.mrf.mxu1 }
  0xeb   :  { %v404_v41 = vpack.c.bf16 %v250_v33, %v249_v29  ;;  %v424_v42 = vpack.c.bf16 %v258_v34, %v257_v30  ;;  %v248_v43 = vmax.f32 %v188_v35, 0.0  ;;  %v256_v44 = vmax.f32 %v220_v36, 0.0 }
  0xec   :  { %v209_v45 = vadd.f32 %v481_v39, %v347_v16  ;;  %v241_v46 = vadd.f32 %v489_v40, %v347_v16  ;;  %v200_v47 = vpop.f32.mrf.mxu0  ;;  %v232_v48 = vpop.f32.mrf.mxu1 }
  0xed   :  { %436 = vst [vmem:[%s621_s3 + $0x8] sm:$0xff] %v404_v41   ;;  %440 = vst [vmem:[%s621_s3 + $0x28] sm:$0xff] %v424_v42   ;;  %v399_v49 = vpack.c.bf16 %v248_v43, %v247_v37  ;;  %v419_v50 = vpack.c.bf16 %v256_v44, %v255_v38  ;;  %v201_v51 = vadd.f32 %v347_v16, %v200_v47 }
  0xee   :  { %v233_v52 = vadd.f32 %v347_v16, %v232_v48  ;;  %v482_v53 = vpop.f32.mrf.mxu0  ;;  %v490_v54 = vpop.f32.mrf.mxu1  ;;  %v253_v57 = vmax.f32 %v209_v45, 0.0  ;;  %v261_v58 = vmax.f32 %v241_v46, 0.0 }
  0xef   :  { %400 = vst [vmem:[%s621_s3] sm:$0xff] %v399_v49   ;;  %439 = vst [vmem:[%s621_s3 + $0x20] sm:$0xff] %v419_v50   ;;  %v212_v55 = vadd.f32 %v482_v53, %v347_v16  ;;  %v244_v56 = vadd.f32 %v490_v54, %v347_v16  ;;  %v251_v1 = vmax.f32 %v201_v51, 0.0 }
  0xf0   :  { %v203_v59 = vpop.f32.mrf.mxu0  ;;  %v235_v60 = vpop.f32.mrf.mxu1  ;;  %v259_v2 = vmax.f32 %v233_v52, 0.0 }
  0xf1   :  { %v254_v61 = vmax.f32 %v212_v55, 0.0  ;;  %v262_v62 = vmax.f32 %v244_v56, 0.0  ;;  %v204_v63 = vadd.f32 %v347_v16, %v203_v59  ;;  %v236_v0 = vadd.f32 %v347_v16, %v235_v60 }
  0xf3   :  { %v414_v3 = vpack.c.bf16 %v254_v61, %v253_v57  ;;  %v434_v4 = vpack.c.bf16 %v262_v62, %v261_v58  ;;  %v252_v5 = vmax.f32 %v204_v63, 0.0  ;;  %v260_v6 = vmax.f32 %v236_v0, 0.0 }
  0xf5   :  { %438 = vst [vmem:[%s621_s3 + $0x18] sm:$0xff] %v414_v3   ;;  %442 = vst [vmem:[%s621_s3 + $0x38] sm:$0xff] %v434_v4   ;;  %v409_v7 = vpack.c.bf16 %v252_v5, %v251_v1  ;;  %v429_v8 = vpack.c.bf16 %v260_v6, %v259_v2 }
  0xf7   :  { %437 = vst [vmem:[%s621_s3 + $0x10] sm:$0xff] %v409_v7   ;;  %441 = vst [vmem:[%s621_s3 + $0x30] sm:$0xff] %v429_v8  }

// kernel: bottleneck_forward.4
= control target key start
LH: loop header
LB: loop body
LE: loop exit
PB: predicated region body
PF: predicated region fallthrough
CT: control target
= control target key end

     0   :  { %8 = vsyncpa [#allocation5], 0  ;;  %s4027_s12 = smov 0   ;;  %s4242_s0 = inlined_call_operand.vmem [shape: bf16[2,64,128], index: 0, kind: input, shape index: {}]   ;;  %s4243_s1 = inlined_call_operand.hbm [shape: bf16[9,128,128], index: 1, kind: input, shape index: {}]   ;;  %s4244_s2 = inlined_call_operand.vmem [shape: f32[1,128], index: 2, kind: input, shape index: {}]   ;;  %s4245_s3 = inlined_call_operand.vmem [shape: bf16[2,64,128], index: 3, kind: output, shape index: {}]  }
   0x1 LB: > { %s4033_s13 = sadd.s32 4294967295, %s4001_s12   ;;  %p3181_p0 = scmp.ge.s32.totalorder %s4001_s12, 1  ;;  %s4001_s12 = sphi %s4027_s12, %s14_s12  }
   0x2   : > { %p113_p1 = scmp.lt.s32.totalorder %s4001_s12, 3  ;;  %s4003_s14 = smov [#allocation4]  }
   0x3   : > { %s125_s15 = sshll.u32 %s4003_s14, 4  ;;  %p3801_p3 = scmp.eq.s32.totalorder %s4033_s13, 0  ;;  %s126_s15 = int_to_ptr.vmem [resolvable:$true] %s125_s15 }
   0x4   : > { %p4037_p2 = pnand %p3181_p0, %p113_p1  ;;  %s3976_s17 = scalar_lea.vmem %s126_s15, 9216 }
   0x5   : > { %p3977_p7 = scmp.ne.s32.totalorder %s126_s15, %s3976_s17  ;;  %p3984_p10 = scmp.lt.s32.totalorder %s126_s15, %s126_s15 }
   0x6   : > { %p3797_p4 = pneg %p4037_p2  ;;  %p3985_p11 = scmp.lt.s32.totalorder %s3976_s17, %s3976_s17 }
   0x8   : > { %p3798_p5 = pnand %p3801_p3, %p3797_p4  ;;  %p3986_p12 = por %p3985_p11, %p3984_p10 }
   0xa   : > { %p3967_p6 = pneg %p3798_p5 }
   0xc   : > { %p3979_p8 = pnand %p3977_p7, %p3967_p6 }
   0xe   : > { %p3980_p9 = pneg %p3979_p8 }
  0x10   : > { %p3987_p13 = pnand %p3986_p12, %p3980_p9 }
  0x12   : > { %3990 = shalt.err (!%p3987_p13)
}
  0x13   : > { %s4004_s18 = smov 64   ;;  %s4005_s19 = smov 4  }
  0x14   : > { %3800 = dma.hbm_to_vmem [thread:$0]  (!%p3798_p5), %s4243_s1, 9216, %s126_s15, [#allocation5], %s4004_s18, %s4004_s18, %s4005_s19  }
  0x15   : > { %152 = sbr.rel (%p4037_p2) target bundleno = 405 (0x195), region = 32 }
  0x1a   : > { %3996 = dma.done.wait (%p3801_p3), [#allocation5], 9216  }
  0x1b   : > { %3998 = vsyncadd (%p3801_p3), [#allocation5], 4294958080  ;;  %v4006_v0 = vmov 0   ;;  %v3815_v1 = vld [vmem:[#allocation4 + $0x38] sm:$0xff]   ;;  %v3817_v3 = vld [vmem:[#allocation4 + $0x30] sm:$0xff]   ;;  %p176_p0 = scmp.lt.s32.totalorder %s4033_s13, 1 }
  0x1c   : > { %187 = vst [vmem:[#allocation2] sm:$0xf] %v4006_v0  ;;  %188 = vst [vmem:[#allocation2 + $0x4] sm:$0xf] %v4006_v0  ;;  %v3816_v2 = vld [vmem:[#allocation4 + $0x78] sm:$0xff]   ;;  %3489 = vmatprep.subr.bf16.mxu0 %v3815_v1  ;;  %v3818_v4 = vld [vmem:[#allocation4 + $0x70] sm:$0xff]  }
  0x1d   : > { %189 = vst [vmem:[#allocation2 + $0x8] sm:$0xf] %v4006_v0  ;;  %190 = vst [vmem:[#allocation2 + $0xc] sm:$0xf] %v4006_v0  ;;  %3521 = vmatprep.subr.bf16.mxu1 %v3816_v2  ;;  %3490 = vmatpush3.bf16.msra.mxu0 %v3815_v1  ;;  %v3819_v5 = vld [vmem:[#allocation4 + $0x28] sm:$0xff]   ;;  %s4252_s13 = smov (!%p176_p0, %s4033_s13), 1 }
  0x1e   : > { %191 = vst [vmem:[#allocation2 + $0x10] sm:$0xf] %v4006_v0  ;;  %192 = vst [vmem:[#allocation2 + $0x14] sm:$0xf] %v4006_v0  ;;  %3522 = vmatpush3.bf16.msra.mxu1 %v3816_v2  ;;  %3491 = vmatprep.subr.bf16.mxu0 %v3817_v3  ;;  %v3820_v6 = vld [vmem:[#allocation4 + $0x68] sm:$0xff]   ;;  %v3821_v7 = vld [vmem:[#allocation4 + $0x20] sm:$0xff]  }
  0x1f   : > { %193 = vst [vmem:[#allocation2 + $0x18] sm:$0xf] %v4006_v0  ;;  %194 = vst [vmem:[#allocation2 + $0x1c] sm:$0xf] %v4006_v0  ;;  %3523 = vmatprep.subr.bf16.mxu1 %v3818_v4  ;;  %v3822_v8 = vld [vmem:[#allocation4 + $0x60] sm:$0xff]   ;;  %s3343_s22 = sshll.u32 %s4252_s13, 5 }
  0x20   : > { %195 = vst [vmem:[#allocation2 + $0x20] sm:$0xf] %v4006_v0  ;;  %196 = vst [vmem:[#allocation2 + $0x24] sm:$0xf] %v4006_v0  ;;  %v3823_v9 = vld [vmem:[#allocation4 + $0x18] sm:$0xff]   ;;  %s4065_s25 = scalar_lea.vmem %s4242_s0, %s3343_s22  ;;  %v3825_v11 = vld [vmem:[#allocation4 + $0x10] sm:$0xff]   ;;  %s4222_s30 = scalar_lea.vmem %s4245_s3, %s3343_s22 }
  0x21   : > { %197 = vst [vmem:[#allocation2 + $0x28] sm:$0xf] %v4006_v0  ;;  %198 = vst [vmem:[#allocation2 + $0x2c] sm:$0xf] %v4006_v0  ;;  %3492 = vmatpush3.bf16.msra.mxu0 %v3817_v3  ;;  %v3824_v10 = vld [vmem:[#allocation4 + $0x58] sm:$0xff]   ;;  %vm220_vm1 = vcmask 1043456  }
  0x22   : > { %199 = vst [vmem:[#allocation2 + $0x30] sm:$0xf] %v4006_v0  ;;  %200 = vst [vmem:[#allocation2 + $0x34] sm:$0xf] %v4006_v0  ;;  %3524 = vmatpush3.bf16.msra.mxu1 %v3818_v4  ;;  %3493 = vmatprep.subr.bf16.mxu0 %v3819_v5  ;;  %vm221_vm0 = vsmask.f32 7938 }
  0x23   : > { %201 = vst [vmem:[#allocation2 + $0x38] sm:$0xf] %v4006_v0  ;;  %202 = vst [vmem:[#allocation2 + $0x3c] sm:$0xf] %v4006_v0  ;;  %3525 = vmatprep.subr.bf16.mxu1 %v3820_v6  ;;  %v3831_v12 = vld [vmem:[#allocation2] sm:$0xff]   ;;  %v3826_v13 = vld [vmem:[#allocation4 + $0x50] sm:$0xff]  }
  0x24   : > { %203 = vst [vmem:[#allocation2 + $0x40] sm:$0xf] %v4006_v0  ;;  %204 = vst [vmem:[#allocation2 + $0x44] sm:$0xf] %v4006_v0  ;;  %v209_v14 = vld [vmem:[%s4065_s25] sm:$0xf]  ;;  %3505 = vmatprep.mubr.bf16.mxu0 %v3831_v12 }
  0x25   : > { %205 = vst [vmem:[#allocation2 + $0x48] sm:$0xf] %v4006_v0  ;;  %206 = vst [vmem:[#allocation2 + $0x4c] sm:$0xf] %v4006_v0  ;;  %3494 = vmatpush3.bf16.msra.mxu0 %v3819_v5  ;;  %vm226_vm2 = vcmask 1040384   ;;  %v3827_v15 = vld [vmem:[#allocation4 + $0x8] sm:$0xff]  }
  0x26   : > { %207 = vst [vmem:[#allocation2 + $0x50] sm:$0xf] %v4006_v0  ;;  %3526 = vmatpush3.bf16.msra.mxu1 %v3820_v6  ;;  %3495 = vmatprep.subr.bf16.mxu0 %v3821_v7  ;;  %vm227_vm3 = vsmask.f32 256  ;;  %v211_v16 = vshrl.u32 %v209_v14, 16  ;;  %v214_v17 = vshll.u32 %v209_v14, 16  ;;  %vm4069_vm4 = vmand %vm220_vm1, %vm221_vm0 }
  0x27   : > { %3527 = vmatprep.subr.bf16.mxu1 %v3822_v8  ;;  %v3828_v19 = vld [vmem:[#allocation4 + $0x48] sm:$0xff]   ;;  %v223_v20 = vld [vmem:[#allocation2 + $0x8] sm:$0xf]  ;;  %vm4074_vm5 = vmand %vm226_vm2, %vm227_vm3  ;;  %vm669_vm6 = vsmask.f32 7424  ;;  %vm1016_vm7 = vcmask 1046528  }
  0x28   : > { %v232_v21 = vld [vmem:[%s4065_s25 + $0x4] sm:$0xf]  ;;  %v213_v22 = vrot.slane %v211_v16, 7  ;;  %v229_v24 = vld [vmem:[#allocation2 + $0xc] sm:$0x1]  ;;  %v3829_v33 = vld [vmem:[#allocation4] sm:$0xff]  }
  0x29   : > { %3496 = vmatpush3.bf16.msra.mxu0 %v3821_v7  ;;  %v4078_v25 = vld [vmem:[#allocation2] sm:$0xff]   ;;  %v234_v26 = vshrl.u32 %v232_v21, 16  ;;  %v237_v27 = vshll.u32 %v232_v21, 16  ;;  %v243_v28 = vld [vmem:[#allocation2 + $0x10] sm:$0xf]  ;;  %v3830_v38 = vld [vmem:[#allocation4 + $0x40] sm:$0xff]  }
  0x2a   : > { %3528 = vmatpush3.bf16.msra.mxu1 %v3822_v8  ;;  %3497 = vmatprep.subr.bf16.mxu0 %v3823_v9  ;;  %v216_v29 = vor.u32 %v214_v17, %v213_v22  ;;  %v217_v30 = vrot.slane %v213_v22, 4  ;;  %v246_v32 = vld [vmem:[#allocation2 + $0x14] sm:$0x1]  ;;  %v673_v39 = vshll.u32 %v4078_v25, 16  ;;  %v249_v40 = vld [vmem:[%s4065_s25 + $0x8] sm:$0xf] }
  0x2b   : > { %3529 = vmatprep.subr.bf16.mxu1 %v3824_v10  ;;  %v236_v31 = vrot.slane %v234_v26, 7  ;;  %v3836_v43 = vld [vmem:[#allocation4 + $0xb8] sm:$0xff]   ;;  %v251_v44 = vshrl.u32 %v249_v40, 16  ;;  %v254_v45 = vshll.u32 %v249_v40, 16  ;;  %v266_v46 = vld [vmem:[%s4065_s25 + $0xc] sm:$0xf] }
  0x2c   : > { %v224_v34 = vsel %vm4069_vm4, %v216_v29, %v223_v20  ;;  %v230_v35 = vsel %vm4074_vm5, %v217_v30, %v229_v24  ;;  %v260_v47 = vld [vmem:[#allocation2 + $0x18] sm:$0xf]  ;;  %v263_v48 = vld [vmem:[#allocation2 + $0x1c] sm:$0x1]  ;;  %v268_v49 = vshrl.u32 %v266_v46, 16  ;;  %v271_v50 = vshll.u32 %v266_v46, 16 }
  0x2d   : > { %3498 = vmatpush3.bf16.msra.mxu0 %v3823_v9  ;;  %v239_v36 = vor.u32 %v237_v27, %v236_v31  ;;  %v240_v37 = vrot.slane %v236_v31, 4  ;;  %225 = vst [vmem:[#allocation2 + $0x8] sm:$0xf] %v224_v34  ;;  %231 = vst [vmem:[#allocation2 + $0xc] sm:$0x1] %v230_v35  ;;  %v671_v51 = vshrl.u32 %v4078_v25, 16 }
  0x2e   : > { %3530 = vmatpush3.bf16.msra.mxu1 %v3824_v10  ;;  %3499 = vmatprep.subr.bf16.mxu0 %v3825_v11  ;;  %v253_v52 = vrot.slane %v251_v44, 7  ;;  %v277_v53 = vld [vmem:[#allocation2 + $0x20] sm:$0xf]  ;;  %v280_v54 = vld [vmem:[#allocation2 + $0x24] sm:$0x1]  ;;  %v3837_v55 = vld [vmem:[#allocation4 + $0xf8] sm:$0xff]  }
  0x2f   : > { %3531 = vmatprep.subr.bf16.mxu1 %v3826_v13  ;;  %v244_v41 = vsel %vm4069_vm4, %v239_v36, %v243_v28  ;;  %v247_v42 = vsel %vm4074_vm5, %v240_v37, %v246_v32  ;;  %v270_v56 = vrot.slane %v268_v49, 7  ;;  %v675_v57 = vrot.slane %v673_v39, 1  ;;  %v3838_v60 = vld [vmem:[#allocation4 + $0xb0] sm:$0xff]   ;;  %v283_v12 = vld [vmem:[%s4065_s25 + $0x10] sm:$0xf]  ;;  %v3846_v24 = vld [vmem:[#allocation4 + $0xa0] sm:$0xff]  }
  0x30   : > { %245 = vst [vmem:[#allocation2 + $0x10] sm:$0xf] %v244_v41  ;;  %248 = vst [vmem:[#allocation2 + $0x14] sm:$0x1] %v247_v42  ;;  %v256_v58 = vor.u32 %v254_v45, %v253_v52  ;;  %v257_v59 = vrot.slane %v253_v52, 4  ;;  %v285_v14 = vshrl.u32 %v283_v12, 16 }
  0x31   : > { %3500 = vmatpush3.bf16.msra.mxu0 %v3825_v11  ;;  %v273_v61 = vor.u32 %v271_v50, %v270_v56  ;;  %v274_v62 = vrot.slane %v270_v56, 4  ;;  %v676_v5 = vor.u32 %v675_v57, %v671_v51  ;;  %v3839_v20 = vld [vmem:[#allocation4 + $0xf0] sm:$0xff]   ;;  %v300_v22 = vld [vmem:[%s4065_s25 + $0x14] sm:$0xf]  ;;  %v317_v57 = vld [vmem:[%s4065_s25 + $0x18] sm:$0xf] }
  0x32   : > { %3532 = vmatpush3.bf16.msra.mxu1 %v3826_v13  ;;  %3501 = vmatprep.subr.bf16.mxu0 %v3827_v15  ;;  %v261_v0 = vsel %vm4069_vm4, %v256_v58, %v260_v47  ;;  %v264_v1 = vsel %vm4074_vm5, %v257_v59, %v263_v48  ;;  %v3844_v13 = vld [vmem:[#allocation4 + $0xa8] sm:$0xff]   ;;  %v287_v25 = vrot.slane %v285_v14, 7  ;;  %v294_v26 = vld [vmem:[#allocation2 + $0x28] sm:$0xf]  ;;  %v297_v27 = vld [vmem:[#allocation2 + $0x2c] sm:$0x1] }
  0x33   : > { %3533 = vmatprep.subr.bf16.mxu1 %v3828_v19  ;;  %262 = vst [vmem:[#allocation2 + $0x18] sm:$0xf] %v261_v0  ;;  %265 = vst [vmem:[#allocation2 + $0x1c] sm:$0x1] %v264_v1  ;;  %v278_v3 = vsel %vm4069_vm4, %v273_v61, %v277_v53  ;;  %v281_v4 = vsel %vm4074_vm5, %v274_v62, %v280_v54  ;;  %v302_v28 = vshrl.u32 %v300_v22, 16  ;;  %v305_v31 = vshll.u32 %v300_v22, 16 }
  0x34   : > { %v3833_v63 = vld [vmem:[#allocation2 + $0x8] sm:$0xff]   ;;  %279 = vst [vmem:[#allocation2 + $0x20] sm:$0xf] %v278_v3  ;;  %282 = vst [vmem:[#allocation2 + $0x24] sm:$0x1] %v281_v4  ;;  %v291_v35 = vrot.slane %v287_v25, 4 }
  0x35   : > { %3502 = vmatpush3.bf16.msra.mxu0 %v3827_v15  ;;  %v3834_v2 = vld [vmem:[#allocation2 + $0x8] sm:$0xff]   ;;  %v678_v6 = vshll.u32 %v3833_v63, 16  ;;  %v682_v8 = vshrl.u32 %v3833_v63, 16  ;;  %v288_v15 = vshll.u32 %v283_v12, 16  ;;  %v304_v46 = vrot.slane %v302_v28, 7  ;;  %v3852_v48 = vld [vmem:[#allocation4 + $0x98] sm:$0xff]  }
  0x36   : > { %3534 = vmatpush3.bf16.msra.mxu1 %v3828_v19  ;;  %3503 = vmatprep.subr.bf16.mxu0 %v3829_v33  ;;  %v298_v42 = vsel %vm4074_vm5, %v291_v35, %v297_v27  ;;  %v314_v47 = vld [vmem:[#allocation2 + $0x34] sm:$0x1]  ;;  %v3847_v53 = vld [vmem:[#allocation4 + $0xe0] sm:$0xff]   ;;  %v3854_v61 = vld [vmem:[#allocation4 + $0x90] sm:$0xff]   ;;  %v319_v62 = vshrl.u32 %v317_v57, 16  ;;  %v322_v63 = vshll.u32 %v317_v57, 16 }
  0x37   : > { %3535 = vmatprep.subr.bf16.mxu1 %v3830_v38  ;;  %v3835_v7 = vld [vmem:[#allocation2 + $0x10] sm:$0xff]   ;;  %v680_v10 = vrot.slane %v678_v6, 1  ;;  %v290_v34 = vor.u32 %v288_v15, %v287_v25  ;;  %299 = vst [vmem:[#allocation2 + $0x2c] sm:$0x1] %v298_v42  ;;  %v307_v52 = vor.u32 %v305_v31, %v304_v46  ;;  %v308_v54 = vrot.slane %v304_v46, 4  ;;  %v3855_v12 = vld [vmem:[#allocation4 + $0xd0] sm:$0xff]  }
  0x38   : > { %v3840_v9 = vld [vmem:[#allocation2 + $0x10] sm:$0xff]   ;;  %v686_v11 = vshll.u32 %v3835_v7, 16  ;;  %v690_v21 = vshrl.u32 %v3835_v7, 16  ;;  %v334_v0 = vld [vmem:[%s4065_s25 + $0x1c] sm:$0xf]  ;;  %v321_v6 = vrot.slane %v319_v62, 7 }
  0x39   : > { %3504 = vmatpush3.bf16.msra.mxu0 %v3829_v33  ;;  %v681_v16 = vsel %vm669_vm6, %v676_v5, %v680_v10  ;;  %v684_v17 = vor.u32 %v682_v8, %v680_v10  ;;  %v3845_v33 = vld [vmem:[#allocation4 + $0xe8] sm:$0xff]   ;;  %v295_v41 = vsel %vm4069_vm4, %v290_v34, %v294_v26  ;;  %v315_v59 = vsel %vm4074_vm5, %v308_v54, %v314_v47  ;;  %v328_v1 = vld [vmem:[#allocation2 + $0x38] sm:$0xf]  ;;  %v3869_v47 = vld [vmem:[#allocation4 + $0x138] sm:$0xff]  }
  0x3a   : > { %3536 = vmatpush3.bf16.msra.mxu1 %v3830_v38  ;;  %3553 = vmatprep.subr.bf16.mxu0 %v3836_v43  ;;  %v688_v19 = vrot.slane %v686_v11, 1  ;;  %v3841_v30 = vld [vmem:[#allocation2 + $0x18] sm:$0xff]   ;;  %296 = vst [vmem:[#allocation2 + $0x28] sm:$0xf] %v295_v41  ;;  %316 = vst [vmem:[#allocation2 + $0x34] sm:$0x1] %v315_v59 }
  0x3b   : > { %3585 = vmatprep.subr.bf16.mxu1 %v3837_v55  ;;  %3537 = vmatprep.mubr.bf16.mxu1 %v681_v16  ;;  %v3842_v32 = vld [vmem:[#allocation2 + $0x18] sm:$0xff]   ;;  %v694_v37 = vshll.u32 %v3841_v30, 16  ;;  %v3843_v38 = vld [vmem:[#allocation2 + $0x20] sm:$0xff]   ;;  %v698_v39 = vshrl.u32 %v3841_v30, 16  ;;  %v336_v3 = vshrl.u32 %v334_v0, 16  ;;  %v339_v4 = vshll.u32 %v334_v0, 16 }
  0x3c   : > { %3506 = vmatmul.mubr.bf16.vlgmr.msra.gmra.mxu0 %v3834_v2  ;;  %v689_v29 = vsel %vm669_vm6, %v684_v17, %v688_v19  ;;  %v692_v36 = vor.u32 %v690_v21, %v688_v19  ;;  %v3848_v40 = vld [vmem:[#allocation2 + $0x20] sm:$0xff]   ;;  %v702_v45 = vshll.u32 %v3843_v38, 16  ;;  %v706_v58 = vshrl.u32 %v3843_v38, 16  ;;  %v331_v2 = vld [vmem:[#allocation2 + $0x3c] sm:$0x1]  ;;  %v3866_v54 = vld [vmem:[#allocation2 + $0x8] sm:$0xff]  }
  0x3d   : > { %3554 = vmatpush3.bf16.msra.mxu0 %v3836_v43  ;;  %3509 = vmatprep.mubr.bf16.mxu0 %v3840_v9  ;;  %v311_v43 = vld [vmem:[#allocation2 + $0x30] sm:$0xf]  ;;  %v696_v44 = vrot.slane %v694_v37, 1  ;;  %v3860_v7 = vld [vmem:[#allocation4 + $0x88] sm:$0xff]   ;;  %v4116_v9 = vrot.slane %v336_v3, 7  ;;  %v325_v14 = vrot.slane %v321_v6, 4 }
  0x3e   : > { %3555 = vmatprep.subr.bf16.mxu0 %v3838_v60  ;;  %3538 = vmatmul.mubr.bf16.vlgmr.msra.gmra.mxu1 %v689_v29  ;;  %v704_v51 = vrot.slane %v702_v45, 1  ;;  %v312_v56 = vsel %vm4069_vm4, %v307_v52, %v311_v43  ;;  %v345_v15 = vld [vmem:[#allocation2 + $0x40] sm:$0xf]  ;;  %v3863_v34 = vld [vmem:[#allocation4 + $0xc0] sm:$0xff]   ;;  %v3867_v37 = vld [vmem:[#allocation2 + $0x10] sm:$0xff]  }
  0x3f   : > { %3586 = vmatpush3.bf16.msra.mxu1 %v3837_v55  ;;  %v697_v49 = vsel %vm669_vm6, %v692_v36, %v696_v44  ;;  %v700_v50 = vor.u32 %v698_v39, %v696_v44  ;;  %313 = vst [vmem:[#allocation2 + $0x30] sm:$0xf] %v312_v56  ;;  %v341_v16 = vor.u32 %v339_v4, %v4116_v9  ;;  %v3861_v30 = vld [vmem:[#allocation4 + $0xc8] sm:$0xff]   ;;  %v1020_v42 = vrot.slane %v3867_v37, 1  ;;  %v3873_v57 = vld [vmem:[#allocation2 + $0x18] sm:$0xff]  }
  0x40   : > { %3587 = vmatprep.subr.bf16.mxu1 %v3839_v20  ;;  %3541 = vmatprep.mubr.bf16.mxu1 %v697_v49  ;;  %v708_v10 = vor.u32 %v706_v58, %v704_v51  ;;  %v332_v21 = vsel %vm4074_vm5, %v325_v14, %v331_v2  ;;  %v3864_v31 = vld [vmem:[#allocation2] sm:$0xfe]   ;;  %v3871_v58 = vld [vmem:[#allocation4 + $0x130] sm:$0xff]   ;;  %v1022_v59 = vrot.slane %v3873_v57, 1 }
  0x41   : > { %3556 = vmatpush3.bf16.msra.mxu0 %v3838_v60  ;;  %v705_v55 = vsel %vm669_vm6, %v700_v50, %v704_v51  ;;  %v3853_v60 = vld [vmem:[#allocation4 + $0xd8] sm:$0xff]   ;;  %v3849_v5 = vld [vmem:[#allocation2 + $0x28] sm:$0xff]   ;;  %333 = vst [vmem:[#allocation2 + $0x3c] sm:$0x1] %v332_v21  ;;  %v346_v22 = vsel %vm4069_vm4, %v341_v16, %v345_v15  ;;  %v1017_v35 = vrot.slane %v3864_v31, 1  ;;  %v3877_v0 = vld [vmem:[#allocation4 + $0x128] sm:$0xff]  }
  0x42   : > { %3557 = vmatprep.subr.bf16.mxu0 %v3844_v13  ;;  %v3850_v8 = vld [vmem:[#allocation2 + $0x28] sm:$0xff]   ;;  %v710_v11 = vshll.u32 %v3849_v5, 16  ;;  %v714_v19 = vshrl.u32 %v3849_v5, 16  ;;  %347 = vst [vmem:[#allocation2 + $0x40] sm:$0xf] %v346_v22  ;;  %v3870_v50 = vld [vmem:[#allocation4 + $0x178] sm:$0xff]   ;;  %v1023_v62 = vsel %vm1016_vm7, %v1020_v42, %v1022_v59 }
  0x43   : > { %3588 = vmatpush3.bf16.msra.mxu1 %v3839_v20  ;;  %v3872_v2 = vld [vmem:[#allocation4 + $0x170] sm:$0xff]   ;;  %v3879_v5 = vld [vmem:[#allocation4 + $0x120] sm:$0xff]  }
  0x44   : > { %3510 = vmatmul.mubr.bf16.gmra.mxu0 %v3842_v32  ;;  %3589 = vmatprep.subr.bf16.mxu1 %v3845_v33  ;;  %v712_v17 = vrot.slane %v710_v11, 1  ;;  %v3865_v32 = vld [vmem:[#allocation2 + $0x8] sm:$0xff]   ;;  %v3880_v15 = vld [vmem:[#allocation4 + $0x160] sm:$0xff]  }
  0x45   : > { %3558 = vmatpush3.bf16.msra.mxu0 %v3844_v13  ;;  %3513 = vmatprep.mubr.bf16.mxu0 %v3848_v40  ;;  %v324_v13 = vor.u32 %v322_v63, %v321_v6  ;;  %v1018_v36 = vrot.slane %v3865_v32, 1  ;;  %v3881_v4 = vld [vmem:[#allocation2 + $0x28] sm:$0xff]   ;;  %v3895_v32 = vld [vmem:[#allocation4 + $0x100] sm:$0xff]  }
  0x46   : > { %3559 = vmatprep.subr.bf16.mxu0 %v3846_v24  ;;  %3542 = vmatmul.mubr.bf16.gmra.mxu1 %v705_v55  ;;  %v713_v25 = vsel %vm669_vm6, %v708_v10, %v712_v17  ;;  %v3851_v26 = vld [vmem:[#allocation2 + $0x30] sm:$0xff]   ;;  %v716_v28 = vor.u32 %v714_v19, %v712_v17  ;;  %v1026_v6 = vrot.slane %v3881_v4, 1  ;;  %v3876_v10 = vld [vmem:[#allocation2 + $0x20] sm:$0xff]   ;;  %v3882_v14 = vld [vmem:[#allocation2 + $0x28] sm:$0xff]   ;;  %v342_v19 = vrot.slane %v4116_v9, 4 }
  0x47   : > { %3590 = vmatpush3.bf16.msra.mxu1 %v3845_v33  ;;  %v329_v20 = vsel %vm4069_vm4, %v324_v13, %v328_v1  ;;  %3545 = vmatprep.mubr.bf16.mxu1 %v713_v25  ;;  %v3856_v27 = vld [vmem:[#allocation2 + $0x30] sm:$0xff]   ;;  %v718_v29 = vshll.u32 %v3851_v26, 16  ;;  %v722_v33 = vshrl.u32 %v3851_v26, 16  ;;  %v1019_v41 = vsel %vm1016_vm7, %v1017_v35, %v1018_v36  ;;  %v3874_v1 = vld [vmem:[#allocation2 + $0x18] sm:$0xff]   ;;  %v3887_v21 = vld [vmem:[#allocation4 + $0x110] sm:$0xff]  }
  0x48   : > { %3591 = vmatprep.subr.bf16.mxu1 %v3847_v53  ;;  %330 = vst [vmem:[#allocation2 + $0x38] sm:$0xf] %v329_v20  ;;  %v1021_v56 = vsel %vm1016_vm7, %v1018_v36, %v1020_v42  ;;  %v3885_v13 = vld [vmem:[#allocation4 + $0x118] sm:$0xff]   ;;  %v348_v25 = vld [vmem:[#allocation2 + $0x44] sm:$0x1]  ;;  %v3888_v9 = vld [vmem:[#allocation4 + $0x150] sm:$0xff]  }
  0x49   : > { %3560 = vmatpush3.bf16.msra.mxu0 %v3846_v24  ;;  %v3862_v24 = vld [vmem:[#allocation4 + $0x80] sm:$0xff]   ;;  %v720_v18 = vrot.slane %v718_v29, 1  ;;  %v3859_v45 = vld [vmem:[#allocation2 + $0x40] ss:$0 sps:$4 sm:$0x11]   ;;  %v3886_v20 = vld [vmem:[#allocation4 + $0x158] sm:$0xff]   ;;  %v349_v29 = vsel %vm4074_vm5, %v342_v19, %v348_v25 }
  0x4a   : > { %3561 = vmatprep.subr.bf16.mxu0 %v3852_v48  ;;  %v734_v49 = vshll.u32 %v3859_v45, 16  ;;  %v3884_v26 = vld [vmem:[#allocation2 + $0x30] sm:$0xff]   ;;  %350 = vst [vmem:[#allocation2 + $0x44] sm:$0x1] %v349_v29  ;;  %v3896_v42 = vld [vmem:[#allocation4 + $0x140] sm:$0xff]   ;;  %v3905_v57 = vld [vmem:[#allocation4 + $0x1b0] sm:$0xff]  }
  0x4b   : > { %3592 = vmatpush3.bf16.msra.mxu1 %v3847_v53  ;;  %v721_v38 = vsel %vm669_vm6, %v716_v28, %v720_v18  ;;  %v724_v43 = vor.u32 %v722_v33, %v720_v18  ;;  %v3894_v33 = vld [vmem:[#allocation4 + $0x148] sm:$0xff]   ;;  %v3898_v35 = vld [vmem:[#allocation2 + $0x10] sm:$0xff]   ;;  %v3910_v4 = vld [vmem:[#allocation2 + $0x28] sm:$0xff]  }
  0x4c   : > { %3514 = vmatmul.mubr.bf16.gmra.mxu0 %v3850_v8  ;;  %3593 = vmatprep.subr.bf16.mxu1 %v3853_v60  ;;  %v736_v53 = vrot.slane %v734_v49, 1  ;;  %v3878_v8 = vld [vmem:[#allocation4 + $0x168] sm:$0xff]   ;;  %v1594_v37 = vshll.u32 %v3898_v35, 16 }
  0x4d   : > { %3562 = vmatpush3.bf16.msra.mxu0 %v3852_v48  ;;  %3517 = vmatprep.mubr.bf16.mxu0 %v3856_v27 }
  0x4e   : > { %3563 = vmatprep.subr.bf16.mxu0 %v3854_v61  ;;  %3546 = vmatmul.mubr.bf16.gmra.mxu1 %v721_v38  ;;  %v1598_v38 = vshrl.u32 %v3898_v35, 16 }
  0x4f   : > { %3594 = vmatpush3.bf16.msra.mxu1 %v3853_v60  ;;  %v3857_v39 = vld [vmem:[#allocation2 + $0x38] sm:$0xff]   ;;  %v3875_v60 = vld [vmem:[#allocation2 + $0x20] sm:$0xff]  }
  0x50   : > { %3595 = vmatprep.subr.bf16.mxu1 %v3855_v12  ;;  %v3858_v40 = vld [vmem:[#allocation2 + $0x38] sm:$0xff]   ;;  %v726_v44 = vshll.u32 %v3857_v39, 16  ;;  %v730_v46 = vshrl.u32 %v3857_v39, 16  ;;  %v1024_v63 = vrot.slane %v3875_v60, 1  ;;  %v3899_v39 = vld [vmem:[#allocation2 + $0x8] sm:$0xfe]  }
  0x51   : > { %3564 = vmatpush3.bf16.msra.mxu0 %v3854_v61  ;;  %v3868_v61 = vld [vmem:[#allocation2 + $0x10] sm:$0xff]   ;;  %v3889_v17 = vld [vmem:[#allocation2 + $0x38] sm:$0xff]   ;;  %v1932_v45 = vrot.slane %v3899_v39, 1 }
  0x52   : > { %3565 = vmatprep.subr.bf16.mxu0 %v3860_v7  ;;  %v728_v48 = vrot.slane %v726_v44, 1  ;;  %v1025_v3 = vsel %vm1016_vm7, %v1022_v59, %v1024_v63  ;;  %v1027_v11 = vsel %vm1016_vm7, %v1024_v63, %v1026_v6  ;;  %v1030_v22 = vrot.slane %v3889_v17, 1  ;;  %v3890_v31 = vld [vmem:[#allocation2 + $0x38] sm:$0xff]   ;;  %v3904_v59 = vld [vmem:[#allocation4 + $0x1f8] sm:$0xff]  }
  0x53   : > { %3596 = vmatpush3.bf16.msra.mxu1 %v3855_v12  ;;  %v1596_v44 = vrot.slane %v1594_v37, 1  ;;  %v3913_v17 = vld [vmem:[#allocation4 + $0x1a0] sm:$0xff]   ;;  %v3920_v37 = vld [vmem:[#allocation4 + $0x1d8] sm:$0xff]  }
  0x54   : > { %3597 = vmatprep.subr.bf16.mxu1 %v3861_v30  ;;  %3518 = vmatmul.mubr.bf16.gmra.mxu0 %v3858_v40  ;;  %v729_v51 = vsel %vm669_vm6, %v724_v43, %v728_v48  ;;  %v732_v52 = vor.u32 %v730_v46, %v728_v48  ;;  %v3892_v40 = vld [vmem:[#allocation2 + $0x40] sm:$0xff]   ;;  %v3901_v46 = vld [vmem:[#allocation2 + $0x18] sm:$0xff]  }
  0x55   : > { %3566 = vmatpush3.bf16.msra.mxu0 %v3860_v7  ;;  %3569 = vmatprep.mubr.bf16.mxu0 %v1019_v41  ;;  %v3883_v7 = vld [vmem:[#allocation2 + $0x30] sm:$0xff]   ;;  %v3902_v48 = vld [vmem:[#allocation2 + $0x18] sm:$0xff]   ;;  %v1606_v60 = vshrl.u32 %v3901_v46, 16 }
  0x56   : > { %3567 = vmatprep.subr.bf16.mxu0 %v3862_v24  ;;  %3549 = vmatprep.mubr.bf16.mxu1 %v729_v51  ;;  %v737_v55 = vsel %vm669_vm6, %v732_v52, %v736_v53  ;;  %v1028_v12 = vrot.slane %v3883_v7, 1  ;;  %v3900_v41 = vld [vmem:[#allocation2 + $0x10] sm:$0xff]   ;;  %v1602_v51 = vshll.u32 %v3901_v46, 16  ;;  %v3918_v29 = vld [vmem:[#allocation2 + $0x38] sm:$0xff]  }
  0x57   : > { %3598 = vmatpush3.bf16.msra.mxu1 %v3861_v30  ;;  %v3893_v30 = vld [vmem:[#allocation4 + $0x108] sm:$0xff]   ;;  %v3903_v52 = vld [vmem:[#allocation4 + $0x1b8] sm:$0xff]  }
  0x58   : > { %3599 = vmatprep.subr.bf16.mxu1 %v3863_v34  ;;  %3550 = vmatmul.mubr.bf16.gmra.mxu1 %v737_v55  ;;  %v1029_v16 = vsel %vm1016_vm7, %v1026_v6, %v1028_v12  ;;  %v1031_v27 = vsel %vm1016_vm7, %v1028_v12, %v1030_v22 }
  0x59   : > { %3568 = vmatpush3.bf16.msra.mxu0 %v3862_v24  ;;  %3601 = vmatprep.mubr.bf16.mxu1 %v3866_v54  ;;  %v3891_v24 = vld [vmem:[#allocation2 + $0x40] ss:$0 sps:$4 sm:$0x11]   ;;  %v1935_v54 = vrot.slane %v3902_v48, 1 }
  0x5a   : > { %3617 = vmatprep.subr.bf16.mxu0 %v3869_v47  ;;  %v1032_v28 = vrot.slane %v3891_v24, 1 }
  0x5b   : > { %3600 = vmatpush3.bf16.msra.mxu1 %v3863_v34  ;;  %v3897_v34 = vld [vmem:[#allocation2 + $0x8] sm:$0xff]  }
  0x5c   : > { %3649 = vmatprep.subr.bf16.mxu1 %v3870_v50  ;;  %3570 = vmatmul.mubr.bf16.vlgmr.msra.gmra.mxu0 %v1021_v56  ;;  %v1033_v18 = vsel %vm1016_vm7, %v1030_v22, %v1032_v28  ;;  %v1587_v23 = vshrl.u32 %v3897_v34, 16  ;;  %v1589_v36 = vshll.u32 %v3897_v34, 16  ;;  %v1604_v56 = vrot.slane %v1602_v51, 1  ;;  %v3916_v22 = vld [vmem:[#allocation2 + $0x30] sm:$0xff]  }
  0x5d   : > { %3618 = vmatpush3.bf16.msra.mxu0 %v3869_v47  ;;  %3573 = vmatprep.mubr.bf16.mxu0 %v1023_v62  ;;  %v1933_v47 = vrot.slane %v3900_v41, 1  ;;  %v3908_v62 = vld [vmem:[#allocation2 + $0x20] sm:$0xff]  }
  0x5e   : > { %3619 = vmatprep.subr.bf16.mxu0 %v3871_v58  ;;  %v1591_v43 = vrot.slane %v1589_v36, 1  ;;  %v1937_v6 = vrot.slane %v3908_v62, 1  ;;  %v3923_v41 = vld [vmem:[#allocation2 + $0x40] sm:$0xff]   ;;  %v3930_v62 = vld [vmem:[#allocation4 + $0x1c0] sm:$0xff]  }
  0x5f   : > { %v1934_v53 = vsel %vm1016_vm7, %v1932_v45, %v1933_v47  ;;  %v1936_v63 = vsel %vm1016_vm7, %v1933_v47, %v1935_v54  ;;  %v1642_v46 = vshll.u32 %v3923_v41, 16  ;;  %v3925_v47 = vld [vmem:[#allocation2 + $0x48] ss:$0 sps:$4 sm:$0x11]  }
  0x60   : > { %3602 = vmatmul.mubr.bf16.vlgmr.msra.gmra.mxu1 %v3868_v61  ;;  %v1592_v49 = vor.u32 %v1591_v43, %v1587_v23  ;;  %v3907_v61 = vld [vmem:[#allocation2 + $0x20] sm:$0xff]   ;;  %v1938_v12 = vsel %vm1016_vm7, %v1935_v54, %v1937_v6  ;;  %v1650_v51 = vshll.u32 %v3925_v47, 16  ;;  %v3946_v47 = vld [vmem:[#allocation2 + $0x38] sm:$0xff]  }
  0x61   : > { %3620 = vmatpush3.bf16.msra.mxu0 %v3871_v58  ;;  %3650 = vmatpush3.bf16.msra.mxu1 %v3870_v50  ;;  %v1600_v50 = vor.u32 %v1598_v38, %v1596_v44  ;;  %v3921_v38 = vld [vmem:[#allocation4 + $0x190] sm:$0xff]   ;;  %v3924_v43 = vld [vmem:[#allocation2 + $0x40] sm:$0xff]  }
  0x62   : > { %3621 = vmatprep.subr.bf16.mxu0 %v3877_v0  ;;  %3605 = vmatprep.mubr.bf16.mxu1 %v3874_v1  ;;  %v1597_v55 = vsel %vm669_vm6, %v1592_v49, %v1596_v44  ;;  %v1610_v1 = vshll.u32 %v3907_v61, 16  ;;  %v1945_v48 = vrot.slane %v3924_v43, 1  ;;  %v1646_v49 = vshrl.u32 %v3923_v41, 16 }
  0x63   : > { %3651 = vmatprep.subr.bf16.mxu1 %v3872_v2  ;;  %v1605_v58 = vsel %vm669_vm6, %v1600_v50, %v1604_v56  ;;  %v1644_v50 = vrot.slane %v1642_v46, 1 }
  0x64   : > { %3574 = vmatmul.mubr.bf16.gmra.mxu0 %v1025_v3  ;;  %v1614_v3 = vshrl.u32 %v3907_v61, 16  ;;  %v1612_v7 = vrot.slane %v1610_v1, 1  ;;  %v3932_v1 = vld [vmem:[#allocation2 + $0x10] sm:$0xff]  }
  0x65   : > { %3622 = vmatpush3.bf16.msra.mxu0 %v3877_v0  ;;  %3577 = vmatprep.mubr.bf16.mxu0 %v1027_v11  ;;  %v1608_v0 = vor.u32 %v1606_v60, %v1604_v56  ;;  %v3911_v11 = vld [vmem:[#allocation4 + $0x1a8] sm:$0xff]   ;;  %v1648_v56 = vor.u32 %v1646_v49, %v1644_v50  ;;  %v3929_v60 = vld [vmem:[#allocation4 + $0x180] sm:$0xff]  }
  0x66   : > { %3623 = vmatprep.subr.bf16.mxu0 %v3879_v5  ;;  %3652 = vmatpush3.bf16.msra.mxu1 %v3872_v2  ;;  %v3909_v2 = vld [vmem:[#allocation2 + $0x28] sm:$0xff]  }
  0x67   : > { %3653 = vmatprep.subr.bf16.mxu1 %v3878_v8  ;;  %v1622_v19 = vshrl.u32 %v3909_v2, 16 }
  0x68   : > { %3606 = vmatmul.mubr.bf16.gmra.mxu1 %v3876_v10  ;;  %v1939_v10 = vrot.slane %v3910_v4, 1  ;;  %v2504_v4 = vshll.u32 %v3932_v1, 16 }
  0x69   : > { %3624 = vmatpush3.bf16.msra.mxu0 %v3879_v5  ;;  %3609 = vmatprep.mubr.bf16.mxu1 %v3882_v14  ;;  %v3906_v5 = vld [vmem:[#allocation4 + $0x1f0] sm:$0xff]   ;;  %v1616_v14 = vor.u32 %v1614_v3, %v1612_v7  ;;  %v2502_v3 = vshrl.u32 %v3932_v1, 16  ;;  %v3956_v1 = vld [vmem:[#allocation2 + $0x10] sm:$0xfe]  }
  0x6a   : > { %3625 = vmatprep.subr.bf16.mxu0 %v3885_v13  ;;  %3654 = vmatpush3.bf16.msra.mxu1 %v3878_v8  ;;  %v1618_v8 = vshll.u32 %v3909_v2, 16  ;;  %v1940_v24 = vsel %vm1016_vm7, %v1937_v6, %v1939_v10  ;;  %v3933_v2 = vld [vmem:[#allocation2 + $0x18] sm:$0xff]   ;;  %v3935_v6 = vld [vmem:[#allocation2 + $0x20] sm:$0xff]  }
  0x6b   : > { %3655 = vmatprep.subr.bf16.mxu1 %v3880_v15 }
  0x6c   : > { %3578 = vmatmul.mubr.bf16.gmra.mxu0 %v1029_v16  ;;  %v3912_v16 = vld [vmem:[#allocation4 + $0x1e8] sm:$0xff]  }
  0x6d   : > { %3626 = vmatpush3.bf16.msra.mxu0 %v3885_v13  ;;  %3581 = vmatprep.mubr.bf16.mxu0 %v1031_v27  ;;  %v1613_v13 = vsel %vm669_vm6, %v1608_v0, %v1612_v7  ;;  %v3917_v27 = vld [vmem:[#allocation2 + $0x38] sm:$0xff]   ;;  %v2509_v7 = vshll.u32 %v3933_v2, 16 }
  0x6e   : > { %3627 = vmatprep.subr.bf16.mxu0 %v3887_v21  ;;  %3656 = vmatpush3.bf16.msra.mxu1 %v3880_v15  ;;  %v1620_v15 = vrot.slane %v1618_v8, 1  ;;  %v1638_v39 = vshrl.u32 %v3917_v27, 16  ;;  %v2513_v8 = vshrl.u32 %v3933_v2, 16  ;;  %v3955_v2 = vld [vmem:[#allocation4 + $0x200] sm:$0xff]  }
  0x6f   : > { %3657 = vmatprep.subr.bf16.mxu1 %v3886_v20 }
  0x70   : > { %3610 = vmatmul.mubr.bf16.gmra.mxu1 %v3884_v26  ;;  %v1624_v25 = vor.u32 %v1622_v19, %v1620_v15  ;;  %v3939_v19 = vld [vmem:[#allocation2 + $0x28] sm:$0xff]  }
  0x71   : > { %3628 = vmatpush3.bf16.msra.mxu0 %v3887_v21  ;;  %3613 = vmatprep.mubr.bf16.mxu1 %v3890_v31  ;;  %v3915_v21 = vld [vmem:[#allocation2 + $0x30] sm:$0xff]  }
  0x72   : > { %3629 = vmatprep.subr.bf16.mxu0 %v3893_v30  ;;  %3658 = vmatpush3.bf16.msra.mxu1 %v3886_v20  ;;  %v1621_v20 = vsel %vm669_vm6, %v1616_v14, %v1620_v15  ;;  %v1626_v26 = vshll.u32 %v3915_v21, 16  ;;  %v1630_v28 = vshrl.u32 %v3915_v21, 16  ;;  %v2511_v14 = vrot.slane %v2509_v7, 1  ;;  %v3938_v15 = vld [vmem:[#allocation2 + $0x20] sm:$0xff]   ;;  %v3959_v7 = vld [vmem:[#allocation2 + $0x38] sm:$0xff]  }
  0x73   : > { %3659 = vmatprep.subr.bf16.mxu1 %v3888_v9  ;;  %v2521_v21 = vshrl.u32 %v3935_v6, 16 }
  0x74   : > { %3582 = vmatmul.mubr.bf16.gmra.mxu0 %v1033_v18  ;;  %v1628_v31 = vrot.slane %v1626_v26, 1  ;;  %v1943_v18 = vrot.slane %v3918_v29, 1  ;;  %v3942_v29 = vld [vmem:[#allocation4 + $0x228] sm:$0xff]  }
  0x75   : > { %3630 = vmatpush3.bf16.msra.mxu0 %v3893_v30  ;;  %3633 = vmatprep.mubr.bf16.mxu0 %v1597_v55  ;;  %v1941_v30 = vrot.slane %v3916_v22, 1 }
  0x76   : > { %3631 = vmatprep.subr.bf16.mxu0 %v3895_v32  ;;  %3660 = vmatpush3.bf16.msra.mxu1 %v3888_v9  ;;  %v3914_v9 = vld [vmem:[#allocation4 + $0x1e0] sm:$0xff]   ;;  %v1629_v35 = vsel %vm669_vm6, %v1624_v25, %v1628_v31  ;;  %v1632_v23 = vor.u32 %v1630_v28, %v1628_v31  ;;  %v1946_v54 = vsel %vm1016_vm7, %v1943_v18, %v1945_v48  ;;  %v3941_v25 = vld [vmem:[#allocation2 + $0x30] sm:$0xff]   ;;  %v2529_v28 = vshrl.u32 %v3939_v19, 16  ;;  %v3940_v31 = vld [vmem:[#allocation2 + $0x28] sm:$0xff]  }
  0x77   : > { %3661 = vmatprep.subr.bf16.mxu1 %v3894_v33  ;;  %v1942_v34 = vsel %vm1016_vm7, %v1939_v10, %v1941_v30  ;;  %v1944_v44 = vsel %vm1016_vm7, %v1941_v30, %v1943_v18  ;;  %v2506_v10 = vrot.slane %v2504_v4, 1  ;;  %v2533_v30 = vshll.u32 %v3941_v25, 16  ;;  %v3958_v4 = vld [vmem:[#allocation2 + $0x30] sm:$0xff]  }
  0x78   : > { %3614 = vmatmul.mubr.bf16.gmra.mxu1 %v3892_v40 }
  0x79   : > { %3632 = vmatpush3.bf16.msra.mxu0 %v3895_v32  ;;  %3665 = vmatprep.mubr.bf16.mxu1 %v1934_v53  ;;  %v1634_v32 = vshll.u32 %v3917_v27, 16  ;;  %v3927_v53 = vld [vmem:[#allocation4 + $0x188] sm:$0xff]  }
  0x7a   : > { %3681 = vmatprep.subr.bf16.mxu0 %v3903_v52  ;;  %3662 = vmatpush3.bf16.msra.mxu1 %v3894_v33  ;;  %v3919_v33 = vld [vmem:[#allocation4 + $0x198] sm:$0xff]  }
  0x7b   : > { %3663 = vmatprep.subr.bf16.mxu1 %v3896_v42  ;;  %v1636_v36 = vrot.slane %v1634_v32, 1  ;;  %v2537_v32 = vshrl.u32 %v3941_v25, 16 }
  0x7c   : > { %3634 = vmatmul.mubr.bf16.vlgmr.msra.gmra.mxu0 %v1605_v58 }
  0x7d   : > { %3682 = vmatpush3.bf16.msra.mxu0 %v3903_v52  ;;  %3637 = vmatprep.mubr.bf16.mxu0 %v1613_v13  ;;  %v1637_v40 = vsel %vm669_vm6, %v1632_v23, %v1636_v36  ;;  %v1640_v45 = vor.u32 %v1638_v39, %v1636_v36  ;;  %v3926_v52 = vld [vmem:[#allocation2 + $0x48] ss:$0 sps:$4 sm:$0x11]   ;;  %v3945_v23 = vld [vmem:[#allocation2 + $0x38] sm:$0xff]   ;;  %v3944_v36 = vld [vmem:[#allocation2 + $0x30] sm:$0xff]  }
  0x7e   : > { %3664 = vmatpush3.bf16.msra.mxu1 %v3896_v42  ;;  %3683 = vmatprep.subr.bf16.mxu0 %v3905_v57  ;;  %v3922_v42 = vld [vmem:[#allocation4 + $0x1d0] sm:$0xff]   ;;  %v1947_v58 = vrot.slane %v3926_v52, 1  ;;  %v3947_v39 = vld [vmem:[#allocation2 + $0x40] sm:$0xff]   ;;  %v2545_v41 = vshrl.u32 %v3945_v23, 16 }
  0x7f   : > { %3713 = vmatprep.subr.bf16.mxu1 %v3904_v59  ;;  %v1645_v55 = vsel %vm669_vm6, %v1640_v45, %v1644_v50  ;;  %v3937_v13 = vld [vmem:[#allocation4 + $0x230] sm:$0xff]   ;;  %v2549_v43 = vshll.u32 %v3947_v39, 16  ;;  %v2553_v45 = vshrl.u32 %v3947_v39, 16  ;;  %v3953_v52 = vld [vmem:[#allocation2 + $0x50] ss:$0 sps:$4 sm:$0x11]  }
  0x80   : > { %v1948_v0 = vsel %vm1016_vm7, %v1945_v48, %v1947_v58  ;;  %v3951_v50 = vld [vmem:[#allocation2 + $0x48] sm:$0xff]  }
  0x81   : > { %3666 = vmatmul.mubr.bf16.vlgmr.msra.gmra.mxu1 %v1936_v63  ;;  %3684 = vmatpush3.bf16.msra.mxu0 %v3905_v57  ;;  %v1652_v57 = vrot.slane %v1650_v51, 1  ;;  %v3931_v63 = vld [vmem:[#allocation2 + $0x10] sm:$0xff]   ;;  %v2551_v49 = vrot.slane %v2549_v43, 1  ;;  %v3949_v51 = vld [vmem:[#allocation4 + $0x210] sm:$0xff]  }
  0x82   : > { %3714 = vmatpush3.bf16.msra.mxu1 %v3904_v59  ;;  %3669 = vmatprep.mubr.bf16.mxu1 %v1938_v12  ;;  %v3928_v59 = vld [vmem:[#allocation4 + $0x1c8] sm:$0xff]   ;;  %v3936_v12 = vld [vmem:[#allocation4 + $0x238] sm:$0xff]  }
  0x83   : > { %3715 = vmatprep.subr.bf16.mxu1 %v3906_v5  ;;  %3685 = vmatprep.subr.bf16.mxu0 %v3911_v11  ;;  %v1653_v61 = vsel %vm669_vm6, %v1648_v56, %v1652_v57  ;;  %v2561_v56 = vshrl.u32 %v3951_v50, 16  ;;  %v2565_v57 = vshll.u32 %v3953_v52, 16 }
  0x84   : > { %3638 = vmatmul.mubr.bf16.gmra.mxu0 %v1621_v20  ;;  %v2515_v20 = vor.u32 %v2513_v8, %v2511_v14  ;;  %v3960_v8 = vld [vmem:[#allocation2 + $0x20] sm:$0xff]  }
  0x85   : > { %3686 = vmatpush3.bf16.msra.mxu0 %v3911_v11  ;;  %3641 = vmatprep.mubr.bf16.mxu0 %v1629_v35  ;;  %v2517_v11 = vshll.u32 %v3935_v6, 16  ;;  %v3943_v35 = vld [vmem:[#allocation4 + $0x220] sm:$0xff]   ;;  %v2847_v6 = vrot.slane %v3956_v1, 1 }
  0x86   : > { %3716 = vmatpush3.bf16.msra.mxu1 %v3906_v5  ;;  %3687 = vmatprep.subr.bf16.mxu0 %v3913_v17  ;;  %v3934_v5 = vld [vmem:[#allocation2 + $0x18] sm:$0xff]  }
  0x87   : > { %3717 = vmatprep.subr.bf16.mxu1 %v3912_v16 }
  0x89   : > { %3670 = vmatmul.mubr.bf16.gmra.mxu1 %v1940_v24  ;;  %3688 = vmatpush3.bf16.msra.mxu0 %v3913_v17  ;;  %v2519_v17 = vrot.slane %v2517_v11, 1  ;;  %v2525_v24 = vshll.u32 %v3939_v19, 16  ;;  %v2856_v11 = vrot.slane %v3959_v7, 1  ;;  %v3963_v19 = vld [vmem:[#allocation2 + $0x48] sm:$0xff]  }
  0x8a   : > { %3718 = vmatpush3.bf16.msra.mxu1 %v3912_v16  ;;  %3673 = vmatprep.mubr.bf16.mxu1 %v1942_v34  ;;  %v2507_v16 = vor.u32 %v2506_v10, %v2502_v3  ;;  %v2535_v34 = vrot.slane %v2533_v30, 1  ;;  %v2854_v10 = vrot.slane %v3958_v4, 1  ;;  %v2860_v25 = vrot.slane %v3963_v19, 1 }
  0x8b   : > { %3719 = vmatprep.subr.bf16.mxu1 %v3914_v9  ;;  %3689 = vmatprep.subr.bf16.mxu0 %v3919_v33  ;;  %v2520_v26 = vsel %vm669_vm6, %v2515_v20, %v2519_v17  ;;  %v2523_v27 = vor.u32 %v2521_v21, %v2519_v17 }
  0x8c   : > { %3642 = vmatmul.mubr.bf16.gmra.mxu0 %v1637_v40  ;;  %v2512_v22 = vsel %vm669_vm6, %v2507_v16, %v2511_v14  ;;  %v3961_v16 = vld [vmem:[#allocation2 + $0x40] sm:$0xff]   ;;  %v2857_v20 = vsel %vm1016_vm7, %v2854_v10, %v2856_v11 }
  0x8d   : > { %3690 = vmatpush3.bf16.msra.mxu0 %v3919_v33  ;;  %3645 = vmatprep.mubr.bf16.mxu0 %v1645_v55  ;;  %v2557_v55 = vshll.u32 %v3951_v50, 16 }
  0x8e   : > { %3720 = vmatpush3.bf16.msra.mxu1 %v3914_v9  ;;  %3691 = vmatprep.subr.bf16.mxu0 %v3921_v38  ;;  %v2527_v9 = vrot.slane %v2525_v24, 1 }
  0x8f   : > { %3721 = vmatprep.subr.bf16.mxu1 %v3920_v37 }
  0x90   : > { %v2528_v18 = vsel %vm669_vm6, %v2523_v27, %v2527_v9  ;;  %v2531_v33 = vor.u32 %v2529_v28, %v2527_v9  ;;  %v3964_v27 = vld [vmem:[#allocation2 + $0x50] ss:$0 sps:$4 sm:$0x11]  }
  0x91   : > { %3674 = vmatmul.mubr.bf16.gmra.mxu1 %v1944_v44  ;;  %3692 = vmatpush3.bf16.msra.mxu0 %v3921_v38  ;;  %v2541_v38 = vshll.u32 %v3945_v23, 16  ;;  %v3948_v44 = vld [vmem:[#allocation4 + $0x218] sm:$0xff]   ;;  %v2862_v9 = vrot.slane %v3964_v27, 1 }
  0x92   : > { %3722 = vmatpush3.bf16.msra.mxu1 %v3920_v37  ;;  %3677 = vmatprep.mubr.bf16.mxu1 %v1946_v54  ;;  %v2539_v37 = vor.u32 %v2537_v32, %v2535_v34  ;;  %v2536_v40 = vsel %vm669_vm6, %v2531_v33, %v2535_v34  ;;  %v2555_v54 = vor.u32 %v2553_v45, %v2551_v49 }
  0x93   : > { %3723 = vmatprep.subr.bf16.mxu1 %v3922_v42  ;;  %3693 = vmatprep.subr.bf16.mxu0 %v3927_v53  ;;  %v2863_v30 = vsel %vm1016_vm7, %v2860_v25, %v2862_v9 }
  0x94   : > { %3646 = vmatmul.mubr.bf16.gmra.mxu0 %v1653_v61  ;;  %v3952_v61 = vld [vmem:[#allocation2 + $0x48] sm:$0xff]  }
  0x95   : > { %3694 = vmatpush3.bf16.msra.mxu0 %v3927_v53  ;;  %3697 = vmatprep.mubr.bf16.mxu0 %v3931_v63  ;;  %v3950_v53 = vld [vmem:[#allocation2 + $0x40] sm:$0xff]   ;;  %v3957_v63 = vld [vmem:[#allocation2 + $0x18] sm:$0xff]  }
  0x96   : > { %3724 = vmatpush3.bf16.msra.mxu1 %v3922_v42  ;;  %3695 = vmatprep.subr.bf16.mxu0 %v3929_v60  ;;  %v2543_v42 = vrot.slane %v2541_v38, 1  ;;  %v2848_v3 = vrot.slane %v3957_v63, 1 }
  0x97   : > { %3725 = vmatprep.subr.bf16.mxu1 %v3928_v59 }
  0x98   : > { %v2544_v46 = vsel %vm669_vm6, %v2539_v37, %v2543_v42  ;;  %v2547_v48 = vor.u32 %v2545_v41, %v2543_v42 }
  0x99   : > { %3678 = vmatmul.mubr.bf16.gmra.mxu1 %v1948_v0  ;;  %3696 = vmatpush3.bf16.msra.mxu0 %v3929_v60  ;;  %v3954_v60 = vld [vmem:[#allocation4 + $0x208] sm:$0xff]  }
  0x9a   : > { %3726 = vmatpush3.bf16.msra.mxu1 %v3928_v59  ;;  %3745 = vmatprep.subr.bf16.mxu0 %v3936_v12  ;;  %v2552_v58 = vsel %vm669_vm6, %v2547_v48, %v2551_v49  ;;  %v2559_v59 = vrot.slane %v2557_v55, 1 }
  0x9b   : > { %3727 = vmatprep.subr.bf16.mxu1 %v3930_v62  ;;  %3729 = vmatprep.mubr.bf16.mxu1 %v2512_v22  ;;  %v2858_v22 = vrot.slane %v3961_v16, 1 }
  0x9c   : > { %3698 = vmatmul.mubr.bf16.vlgmr.msra.gmra.mxu0 %v3934_v5  ;;  %v2560_v0 = vsel %vm669_vm6, %v2555_v54, %v2559_v59  ;;  %v2563_v5 = vor.u32 %v2561_v56, %v2559_v59 }
  0x9d   : > { %3746 = vmatpush3.bf16.msra.mxu0 %v3936_v12  ;;  %3701 = vmatprep.mubr.bf16.mxu0 %v3938_v15  ;;  %v2850_v15 = vrot.slane %v3960_v8, 1  ;;  %v2861_v28 = vsel %vm1016_vm7, %v2858_v22, %v2860_v25 }
  0x9e   : > { %3728 = vmatpush3.bf16.msra.mxu1 %v3930_v62  ;;  %3747 = vmatprep.subr.bf16.mxu0 %v3937_v13  ;;  %v2567_v62 = vrot.slane %v2565_v57, 1 }
  0x9f   : > { %3777 = vmatprep.subr.bf16.mxu1 %v3936_v12  ;;  %v2851_v21 = vsel %vm1016_vm7, %v2848_v3, %v2850_v15 }
  0xa0   : > { %v2568_v14 = vsel %vm669_vm6, %v2563_v5, %v2567_v62 }
  0xa1   : > { %3730 = vmatmul.mubr.bf16.vlgmr.msra.gmra.mxu1 %v2520_v26  ;;  %3748 = vmatpush3.bf16.msra.mxu0 %v3937_v13  ;;  %v2859_v26 = vsel %vm1016_vm7, %v2856_v11, %v2858_v22 }
  0xa2   : > { %3785 = vmatpush3.bf16.msra.mxu1 %v3936_v12  ;;  %3733 = vmatprep.mubr.bf16.mxu1 %v2528_v18  ;;  %v2849_v12 = vsel %vm1016_vm7, %v2847_v6, %v2848_v3 }
  0xa3   : > { %3778 = vmatprep.subr.bf16.mxu1 %v3937_v13  ;;  %3749 = vmatprep.subr.bf16.mxu0 %v3942_v29 }
  0xa4   : > { %3702 = vmatmul.mubr.bf16.gmra.mxu0 %v3940_v31 }
  0xa5   : > { %3750 = vmatpush3.bf16.msra.mxu0 %v3942_v29  ;;  %3705 = vmatprep.mubr.bf16.mxu0 %v3944_v36 }
  0xa6   : > { %3786 = vmatpush3.bf16.msra.mxu1 %v3937_v13  ;;  %3751 = vmatprep.subr.bf16.mxu0 %v3943_v35  ;;  %v3962_v13 = vld [vmem:[#allocation2 + $0x28] sm:$0xff]  }
  0xa7   : > { %3779 = vmatprep.subr.bf16.mxu1 %v3942_v29  ;;  %v2852_v17 = vrot.slane %v3962_v13, 1 }
  0xa9   : > { %3734 = vmatmul.mubr.bf16.gmra.mxu1 %v2536_v40  ;;  %3752 = vmatpush3.bf16.msra.mxu0 %v3943_v35  ;;  %v2853_v24 = vsel %vm1016_vm7, %v2850_v15, %v2852_v17 }
  0xaa   : > { %3787 = vmatpush3.bf16.msra.mxu1 %v3942_v29  ;;  %3737 = vmatprep.mubr.bf16.mxu1 %v2544_v46  ;;  %v2855_v29 = vsel %vm1016_vm7, %v2852_v17, %v2854_v10 }
  0xab   : > { %3780 = vmatprep.subr.bf16.mxu1 %v3943_v35  ;;  %3753 = vmatprep.subr.bf16.mxu0 %v3948_v44 }
  0xac   : > { %3706 = vmatmul.mubr.bf16.gmra.mxu0 %v3946_v47 }
  0xad   : > { %3754 = vmatpush3.bf16.msra.mxu0 %v3948_v44  ;;  %3709 = vmatprep.mubr.bf16.mxu0 %v3950_v53 }
  0xae   : > { %3788 = vmatpush3.bf16.msra.mxu1 %v3943_v35  ;;  %3755 = vmatprep.subr.bf16.mxu0 %v3949_v51 }
  0xaf   : > { %3781 = vmatprep.subr.bf16.mxu1 %v3948_v44 }
  0xb1   : > { %3738 = vmatmul.mubr.bf16.gmra.mxu1 %v2552_v58  ;;  %3756 = vmatpush3.bf16.msra.mxu0 %v3949_v51 }
  0xb2   : > { %3789 = vmatpush3.bf16.msra.mxu1 %v3948_v44  ;;  %3741 = vmatprep.mubr.bf16.mxu1 %v2560_v0 }
  0xb3   : > { %3782 = vmatprep.subr.bf16.mxu1 %v3949_v51  ;;  %3757 = vmatprep.subr.bf16.mxu0 %v3954_v60 }
  0xb4   : > { %3710 = vmatmul.mubr.bf16.gmra.mxu0 %v3952_v61 }
  0xb5   : > { %3758 = vmatpush3.bf16.msra.mxu0 %v3954_v60  ;;  %3761 = vmatprep.mubr.bf16.mxu0 %v2849_v12 }
  0xb6   : > { %3790 = vmatpush3.bf16.msra.mxu1 %v3949_v51  ;;  %3759 = vmatprep.subr.bf16.mxu0 %v3955_v2 }
  0xb7   : > { %3783 = vmatprep.subr.bf16.mxu1 %v3954_v60 }
  0xb9   : > { %3742 = vmatmul.mubr.bf16.gmra.mxu1 %v2568_v14  ;;  %3760 = vmatpush3.bf16.msra.mxu0 %v3955_v2 }
  0xba   : > { %3791 = vmatpush3.bf16.msra.mxu1 %v3954_v60  ;;  %3769 = vmatprep.mubr.bf16.mxu1 %v2857_v20 }
  0xbb   : > { %3784 = vmatprep.subr.bf16.mxu1 %v3955_v2 }
  0xbc   : > { %3762 = vmatmul.mubr.bf16.vlgmr.msra.gmra.mxu0 %v2851_v21 }
  0xbd   : > { %3765 = vmatprep.mubr.bf16.mxu0 %v2853_v24 }
  0xbe   : > { %3792 = vmatpush3.bf16.msra.mxu1 %v3955_v2 }
  0xc1   : > { %3770 = vmatmul.mubr.bf16.vlgmr.msra.gmra.mxu1 %v2859_v26 }
  0xc2   : > { %3773 = vmatprep.mubr.bf16.mxu1 %v2861_v28 }
  0xc4   : > { %3766 = vmatmul.mubr.bf16.gmra.mxu0 %v2855_v29 }
  0xc9   : > { %3774 = vmatmul.mubr.bf16.gmra.mxu1 %v2863_v30 }
  0xfc   : > { %v3507_v31 = vpop.f32.mrf.mxu0 }
  0xfe   : > { %v513_v32 = vpop.f32.mrf.mxu0  ;;  %v3539_v33 = vpop.f32.mrf.mxu1 }
  0xff   : > { %v909_v35 = vadd.f32 %v3539_v33, %v3507_v31 }
 0x100   : > { %v3508_v18 = vpop.f32.mrf.mxu0  ;;  %v828_v23 = vpop.f32.mrf.mxu1 }
 0x101   : > { %v907_v37 = vadd.f32 %v828_v23, %v513_v32 }
 0x102   : > { %v516_v34 = vpop.f32.mrf.mxu0  ;;  %v3540_v38 = vpop.f32.mrf.mxu1 }
 0x104   : > { %v3511_v36 = vpop.f32.mrf.mxu0  ;;  %v831_v40 = vpop.f32.mrf.mxu1 }
 0x106   : > { %v529_v39 = vpop.f32.mrf.mxu0  ;;  %v3543_v42 = vpop.f32.mrf.mxu1 }
 0x107   : > { %v913_v44 = vadd.f32 %v3543_v42, %v3511_v36 }
 0x108   : > { %v3512_v41 = vpop.f32.mrf.mxu0  ;;  %v844_v45 = vpop.f32.mrf.mxu1 }
 0x109   : > { %v911_v46 = vadd.f32 %v844_v45, %v529_v39 }
 0x10a   : > { %v532_v43 = vpop.f32.mrf.mxu0  ;;  %v3544_v47 = vpop.f32.mrf.mxu1 }
 0x10c   : > { %v3515_v48 = vpop.f32.mrf.mxu0  ;;  %v847_v49 = vpop.f32.mrf.mxu1 }
 0x10e   : > { %v545_v50 = vpop.f32.mrf.mxu0  ;;  %v3547_v53 = vpop.f32.mrf.mxu1 }
 0x10f   : > { %v917_v54 = vadd.f32 %v3547_v53, %v3515_v48 }
 0x110   : > { %v3516_v51 = vpop.f32.mrf.mxu0  ;;  %v860_v55 = vpop.f32.mrf.mxu1 }
 0x111   : > { %v915_v57 = vadd.f32 %v860_v55, %v545_v50 }
 0x112   : > { %v548_v52 = vpop.f32.mrf.mxu0  ;;  %v3548_v58 = vpop.f32.mrf.mxu1 }
 0x114   : > { %v3519_v56 = vpop.f32.mrf.mxu0  ;;  %v863_v60 = vpop.f32.mrf.mxu1 }
 0x116   : > { %v561_v59 = vpop.f32.mrf.mxu0 }
 0x118   : > { %v3520_v61 = vpop.f32.mrf.mxu0  ;;  %v3551_v62 = vpop.f32.mrf.mxu1 }
 0x119   : > { %v921_v0 = vadd.f32 %v3551_v62, %v3519_v56 }
 0x11a   : > { %v564_v63 = vpop.f32.mrf.mxu0  ;;  %v876_v1 = vpop.f32.mrf.mxu1 }
 0x11b   : > { %v919_v3 = vadd.f32 %v876_v1, %v561_v59 }
 0x11c   : > { %v3571_v2 = vpop.f32.mrf.mxu0  ;;  %v3552_v5 = vpop.f32.mrf.mxu1 }
 0x11d   : > { %v1205_v4 = vadd.f32 %v3571_v2, %v909_v35 }
 0x11e   : > { %v1124_v6 = vpop.f32.mrf.mxu0  ;;  %v879_v8 = vpop.f32.mrf.mxu1 }
 0x11f   : > { %v1203_v7 = vadd.f32 %v1124_v6, %v907_v37 }
 0x120   : > { %v3572_v10 = vpop.f32.mrf.mxu0  ;;  %v3603_v11 = vpop.f32.mrf.mxu1 }
 0x121   : > { %v4172_v13 = vadd.f32 %v3603_v11, %v1205_v4 }
 0x122   : > { %v1127_v12 = vpop.f32.mrf.mxu0  ;;  %v1398_v14 = vpop.f32.mrf.mxu1 }
 0x123   : > { %v4174_v16 = vadd.f32 %v1398_v14, %v1203_v7 }
 0x124   : > { %v3575_v15 = vpop.f32.mrf.mxu0  ;;  %v3604_v19 = vpop.f32.mrf.mxu1 }
 0x125   : > { %v1209_v17 = vadd.f32 %v3575_v15, %v913_v44 }
 0x126   : > { %v1140_v20 = vpop.f32.mrf.mxu0  ;;  %v1401_v22 = vpop.f32.mrf.mxu1 }
 0x127   : > { %v1207_v21 = vadd.f32 %v1140_v20, %v911_v46 }
 0x128   : > { %v3576_v24 = vpop.f32.mrf.mxu0  ;;  %v3607_v25 = vpop.f32.mrf.mxu1 }
 0x129   : > { %v4176_v27 = vadd.f32 %v3607_v25, %v1209_v17 }
 0x12a   : > { %v1143_v26 = vpop.f32.mrf.mxu0  ;;  %v1414_v28 = vpop.f32.mrf.mxu1 }
 0x12b   : > { %v4178_v9 = vadd.f32 %v1414_v28, %v1207_v21 }
 0x12c   : > { %v3579_v29 = vpop.f32.mrf.mxu0  ;;  %v3608_v31 = vpop.f32.mrf.mxu1 }
 0x12d   : > { %v1213_v30 = vadd.f32 %v3579_v29, %v917_v54 }
 0x12e   : > { %v1156_v32 = vpop.f32.mrf.mxu0  ;;  %v1417_v33 = vpop.f32.mrf.mxu1 }
 0x12f   : > { %v1211_v18 = vadd.f32 %v1156_v32, %v915_v57 }
 0x130   : > { %v3580_v34 = vpop.f32.mrf.mxu0  ;;  %v3611_v35 = vpop.f32.mrf.mxu1 }
 0x131   : > { %v4180_v36 = vadd.f32 %v3611_v35, %v1213_v30 }
 0x132   : > { %v1159_v23 = vpop.f32.mrf.mxu0  ;;  %v1430_v37 = vpop.f32.mrf.mxu1 }
 0x133   : > { %v4182_v39 = vadd.f32 %v1430_v37, %v1211_v18 }
 0x134   : > { %v3583_v38 = vpop.f32.mrf.mxu0  ;;  %v3612_v41 = vpop.f32.mrf.mxu1 }
 0x135   : > { %v1217_v40 = vadd.f32 %v3583_v38, %v921_v0 }
 0x136   : > { %v1172_v42 = vpop.f32.mrf.mxu0  ;;  %v1433_v44 = vpop.f32.mrf.mxu1 }
 0x137   : > { %v1215_v43 = vadd.f32 %v1172_v42, %v919_v3 }
 0x138   : > { %v3584_v45 = vpop.f32.mrf.mxu0  ;;  %v3615_v46 = vpop.f32.mrf.mxu1 }
 0x139   : > { %v4184_v48 = vadd.f32 %v3615_v46, %v1217_v40 }
 0x13a   : > { %v1175_v47 = vpop.f32.mrf.mxu0  ;;  %v1446_v49 = vpop.f32.mrf.mxu1 }
 0x13b   : > { %v4186_v50 = vadd.f32 %v1446_v49, %v1215_v43 }
 0x13c   : > { %v3635_v51 = vpop.f32.mrf.mxu0  ;;  %v3616_v52 = vpop.f32.mrf.mxu1 }
 0x13d   : > { %v1825_v47 = vadd.f32 %v3635_v51, %v4172_v13 }
 0x13e   : > { %v1744_v53 = vpop.f32.mrf.mxu0  ;;  %v1449_v54 = vpop.f32.mrf.mxu1 }
 0x13f   : > { %v1823_v54 = vadd.f32 %v1744_v53, %v4174_v16 }
 0x140   : > { %v3636_v55 = vpop.f32.mrf.mxu0 }
 0x141   : > { %v3667_v56 = vpop.f32.mrf.mxu1 }
 0x142   : > { %v1747_v57 = vpop.f32.mrf.mxu0 }
 0x143   : > { %v2039_v58 = vpop.f32.mrf.mxu1 }
 0x144   : > { %v3639_v60 = vpop.f32.mrf.mxu0 }
 0x145   : > { %v3668_v59 = vpop.f32.mrf.mxu1 }
 0x146   : > { %v1760_v62 = vpop.f32.mrf.mxu0  ;;  %v2120_v59 = vadd.f32 %v3667_v56, %v1825_v47 }
 0x147   : > { %v2042_v61 = vpop.f32.mrf.mxu1 }
 0x148   : > { %v3640_v0 = vpop.f32.mrf.mxu0 }
 0x149   : > { %v4188_v63 = vpop.f32.mrf.mxu1 }
 0x14a   : > { %v1763_v2 = vpop.f32.mrf.mxu0 }
 0x14b   : > { %v4190_v1 = vpop.f32.mrf.mxu1 }
 0x14c   : > { %v3643_v4 = vpop.f32.mrf.mxu0 }
 0x14d   : > { %v3672_v3 = vpop.f32.mrf.mxu1  ;;  %v1833_v61 = vadd.f32 %v3643_v4, %v4180_v36 }
 0x14e   : > { %v1776_v6 = vpop.f32.mrf.mxu0  ;;  %v2118_v3 = vadd.f32 %v2039_v58, %v1823_v54 }
 0x14f   : > { %v2058_v5 = vpop.f32.mrf.mxu1 }
 0x150   : > { %v3644_v8 = vpop.f32.mrf.mxu0  ;;  %v1831_v5 = vadd.f32 %v1776_v6, %v4182_v39 }
 0x151   : > { %v3675_v7 = vpop.f32.mrf.mxu1 }
 0x152   : > { %v1779_v11 = vpop.f32.mrf.mxu0  ;;  %v2128_v13 = vadd.f32 %v3675_v7, %v1833_v61 }
 0x153   : > { %v2071_v10 = vpop.f32.mrf.mxu1  ;;  %v1829_v11 = vadd.f32 %v3639_v60, %v4176_v27  ;;  %v4209_v27 = vld [vmem:[%s4244_s2] ss:$0 sm:$0xff] }
 0x154   : > { %v3647_v14 = vpop.f32.mrf.mxu0 }
 0x155   : > { %v3676_v12 = vpop.f32.mrf.mxu1  ;;  %v2124_v36 = vadd.f32 %v4188_v63, %v1829_v11  ;;  %v1837_v58 = vadd.f32 %v3647_v14, %v4184_v48 }
 0x156   : > { %v1792_v17 = vpop.f32.mrf.mxu0 }
 0x157   : > { %v2074_v15 = vpop.f32.mrf.mxu1 }
 0x158   : > { %v3648_v20 = vpop.f32.mrf.mxu0 }
 0x159   : > { %v4192_v19 = vpop.f32.mrf.mxu1  ;;  %v1827_v20 = vadd.f32 %v1760_v62, %v4178_v9  ;;  %v1835_v62 = vadd.f32 %v1792_v17, %v4186_v50 }
 0x15a   : > { %v1795_v22 = vpop.f32.mrf.mxu0 }
 0x15b   : > { %v4194_v21 = vpop.f32.mrf.mxu1  ;;  %v2126_v22 = vadd.f32 %v2071_v10, %v1831_v5  ;;  %v2122_v9 = vadd.f32 %v4190_v1, %v1827_v20 }
 0x15c   : > { %v3699_v25 = vpop.f32.mrf.mxu0  ;;  %v2130_v50 = vadd.f32 %v4194_v21, %v1835_v62 }
 0x15d   : > { %v3680_v24 = vpop.f32.mrf.mxu1  ;;  %v2394_v8 = vadd.f32 %v3699_v25, %v2120_v59 }
 0x15e   : > { %v2313_v28 = vpop.f32.mrf.mxu0 }
 0x15f   : > { %v2090_v26 = vpop.f32.mrf.mxu1  ;;  %v2392_v51 = vadd.f32 %v2313_v28, %v2118_v3  ;;  %v2132_v28 = vadd.f32 %v4192_v19, %v1837_v58 }
 0x160   : > { %v3700_v30 = vpop.f32.mrf.mxu0 }
 0x161   : > { %v3731_v29 = vpop.f32.mrf.mxu1 }
 0x162   : > { %v2316_v32 = vpop.f32.mrf.mxu0  ;;  %v2740_v56 = vadd.f32 %v3731_v29, %v2394_v8 }
 0x163   : > { %v2659_v31 = vpop.f32.mrf.mxu1 }
 0x164   : > { %v3703_v33 = vpop.f32.mrf.mxu0  ;;  %v2738_v60 = vadd.f32 %v2659_v31, %v2392_v51 }
 0x165   : > { %v3732_v18 = vpop.f32.mrf.mxu1  ;;  %v2398_v10 = vadd.f32 %v3703_v33, %v2124_v36 }
 0x166   : > { %v2329_v35 = vpop.f32.mrf.mxu0 }
 0x167   : > { %v2662_v34 = vpop.f32.mrf.mxu1  ;;  %v2396_v29 = vadd.f32 %v2329_v35, %v2122_v9 }
 0x168   : > { %v3704_v37 = vpop.f32.mrf.mxu0 }
 0x169   : > { %v3735_v23 = vpop.f32.mrf.mxu1 }
 0x16a   : > { %v2332_v40 = vpop.f32.mrf.mxu0  ;;  %v2744_v17 = vadd.f32 %v3735_v23, %v2398_v10 }
 0x16b   : > { %v4196_v38 = vpop.f32.mrf.mxu1 }
 0x16c   : > { %v3707_v42 = vpop.f32.mrf.mxu0 }
 0x16d   : > { %v3736_v41 = vpop.f32.mrf.mxu1  ;;  %v2402_v24 = vadd.f32 %v3707_v42, %v2128_v13 }
 0x16e   : > { %v2345_v44 = vpop.f32.mrf.mxu0 }
 0x16f   : > { %v2678_v43 = vpop.f32.mrf.mxu1  ;;  %v2400_v6 = vadd.f32 %v2345_v44, %v2126_v22 }
 0x170   : > { %v3708_v46 = vpop.f32.mrf.mxu0  ;;  %v2742_v43 = vadd.f32 %v4196_v38, %v2396_v29 }
 0x171   : > { %v3739_v45 = vpop.f32.mrf.mxu1 }
 0x172   : > { %v2348_v52 = vpop.f32.mrf.mxu0  ;;  %v2748_v26 = vadd.f32 %v3739_v45, %v2402_v24 }
 0x173   : > { %v2691_v49 = vpop.f32.mrf.mxu1 }
 0x174   : > { %v3711_v57 = vpop.f32.mrf.mxu0  ;;  %v2746_v31 = vadd.f32 %v2691_v49, %v2400_v6 }
 0x175   : > { %v3740_v55 = vpop.f32.mrf.mxu1  ;;  %v2406_v33 = vadd.f32 %v3711_v57, %v2132_v28 }
 0x176   : > { %v2361_v2 = vpop.f32.mrf.mxu0 }
 0x177   : > { %v2694_v0 = vpop.f32.mrf.mxu1  ;;  %v2404_v21 = vadd.f32 %v2361_v2, %v2130_v50 }
 0x178   : > { %v3712_v15 = vpop.f32.mrf.mxu0 }
 0x179   : > { %v3743_v12 = vpop.f32.mrf.mxu1 }
 0x17a   : > { %v2364_v53 = vpop.f32.mrf.mxu0  ;;  %v2752_v52 = vadd.f32 %v3743_v12, %v2406_v33 }
 0x17b   : > { %v2707_v16 = vpop.f32.mrf.mxu1 }
 0x17c   : > { %v3763_v39 = vpop.f32.mrf.mxu0  ;;  %v2750_v0 = vadd.f32 %v2707_v16, %v2404_v21 }
 0x17d   : > { %v3744_v4 = vpop.f32.mrf.mxu1  ;;  %v3035_v7 = vadd.f32 %v3763_v39, %v2740_v56 }
 0x17e   : > { %v2954_v63 = vpop.f32.mrf.mxu0 }
 0x17f   : > { %v2710_v25 = vpop.f32.mrf.mxu1  ;;  %v3078_v48 = vadd.f32 %v4209_v27, %v3035_v7  ;;  %v3033_v14 = vadd.f32 %v2954_v63, %v2738_v60 }
 0x180   : > { %v3764_v32 = vpop.f32.mrf.mxu0 }
 0x181   : > { %v3771_v30 = vpop.f32.mrf.mxu1  ;;  %v3079_v18 = vmax.f32 %v3078_v48, 0.0  ;;  %v3073_v1 = vadd.f32 %v4209_v27, %v3033_v14 }
 0x182   : > { %v3043_v34 = vadd.f32 %v3771_v30, %v2748_v26  ;;  %v2957_v35 = vpop.f32.mrf.mxu0 }
 0x183   : > { %v2986_v19 = vpop.f32.mrf.mxu1  ;;  %v3080_v37 = vpack.c.bf16 %v3079_v18, %v3079_v18  ;;  %v3074_v41 = vmax.f32 %v3073_v1, 0.0 }
 0x184   : > { %v3098_v40 = vadd.f32 %v4209_v27, %v3043_v34  ;;  %v3041_v42 = vadd.f32 %v2986_v19, %v2746_v31  ;;  %v3767_v44 = vpop.f32.mrf.mxu0 }
 0x185   : > { %v3772_v23 = vpop.f32.mrf.mxu1  ;;  %3081 = vst [vmem:[%s4222_s30 + $0x4] sm:$0xf] %v3080_v37  ;;  %v3075_v46 = vpack.c.bf16 %v3074_v41, %v3074_v41  ;;  %v3039_v49 = vadd.f32 %v3767_v44, %v2744_v17 }
 0x186   : > { %v3099_v45 = vmax.f32 %v3098_v40, 0.0  ;;  %v3093_v47 = vadd.f32 %v4209_v27, %v3041_v42  ;;  %v2970_v55 = vpop.f32.mrf.mxu0 }
 0x187   : > { %v2989_v54 = vpop.f32.mrf.mxu1  ;;  %3076 = vst [vmem:[%s4222_s30] sm:$0xf] %v3075_v46  ;;  %v3088_v61 = vadd.f32 %v4209_v27, %v3039_v49  ;;  %v3037_v38 = vadd.f32 %v2970_v55, %v2742_v43 }
 0x188   : > { %v3100_v57 = vpack.c.bf16 %v3099_v45, %v3099_v45  ;;  %v3094_v59 = vmax.f32 %v3093_v47, 0.0  ;;  %v3768_v3 = vpop.f32.mrf.mxu0 }
 0x189   : > { %v3775_v2 = vpop.f32.mrf.mxu1  ;;  %v3089_v8 = vmax.f32 %v3088_v61, 0.0  ;;  %v3083_v12 = vadd.f32 %v4209_v27, %v3037_v38 }
 0x18a   : > { %3101 = vst [vmem:[%s4222_s30 + $0x14] sm:$0xf] %v3100_v57  ;;  %v3095_v5 = vpack.c.bf16 %v3094_v59, %v3094_v59  ;;  %v3047_v11 = vadd.f32 %v3775_v2, %v2752_v52  ;;  %v2973_v13 = vpop.f32.mrf.mxu0 }
 0x18b   : > { %v3002_v15 = vpop.f32.mrf.mxu1  ;;  %v3090_v51 = vpack.c.bf16 %v3089_v8, %v3089_v8  ;;  %v3084_v53 = vmax.f32 %v3083_v12, 0.0 }
 0x18c   : > { %3096 = vst [vmem:[%s4222_s30 + $0x10] sm:$0xf] %v3095_v5  ;;  %v3108_v20 = vadd.f32 %v4209_v27, %v3047_v11  ;;  %v3045_v16 = vadd.f32 %v3002_v15, %v2750_v0 }
 0x18d   : > { %v3776_v22 = vpop.f32.mrf.mxu1  ;;  %3091 = vst [vmem:[%s4222_s30 + $0xc] sm:$0xf] %v3090_v51  ;;  %v3085_v24 = vpack.c.bf16 %v3084_v53, %v3084_v53 }
 0x18e   : > { %v3109_v56 = vmax.f32 %v3108_v20, 0.0  ;;  %v3103_v36 = vadd.f32 %v4209_v27, %v3045_v16 }
 0x18f   : > { %v3005_v58 = vpop.f32.mrf.mxu1  ;;  %3086 = vst [vmem:[%s4222_s30 + $0x8] sm:$0xf] %v3085_v24 }
 0x190   : > { %v3110_v4 = vpack.c.bf16 %v3109_v56, %v3109_v56  ;;  %v3104_v39 = vmax.f32 %v3103_v36, 0.0 }
 0x192   : > { %3111 = vst [vmem:[%s4222_s30 + $0x1c] sm:$0xf] %v3110_v4  ;;  %v3105_v60 = vpack.c.bf16 %v3104_v39, %v3104_v39 }
 0x194   : > { %3106 = vst [vmem:[%s4222_s30 + $0x18] sm:$0xf] %v3105_v60 }
 0x195 PF: > { %s14_s12 = sadd.s32 1, %s4001_s12  }
 0x196   : > { %p11_p1 = scmp.ge.s32.totalorder %s14_s12, 4  }
 0x198   :  { %13 = sbr.rel (!%p11_p1) target bundleno = 1 (0x1), region = 75 }
 0x19d   :  { %3133 = vsyncpa [#allocation5], 1 }
 0x19e   :  { %3135 = vsyncpa [#allocation5 + $0x1], 1 }

</bundles_post_ra>
